<compile_context>
chip_gen: v5e
topology: v5e:2x2
jax: 0.10.0
libtpu: 0.0.40
codegen_flags: <defaults>
</compile_context>

<pallas_src>
import math

import jax
import jax.numpy as jnp
from jax import lax
from jax.experimental import pallas as pl
from jax.experimental.pallas import tpu as pltpu

BN_EPS = 1e-5


# ----------------------------------------------------------------------------
# static helpers
# ----------------------------------------------------------------------------
def _active_var_shifts(B, M):
    """Sublane-roll shifts of the var-mix whose coefficient plane is NOT
    structurally zero.  A shift s is dead when every row would source its
    value from a different batch (e.g. s == M when B == 2)."""
    BM = B * M
    return [s for s in range(BM)
            if any(((r - s) % BM) // M == r // M for r in range(BM))]


# ----------------------------------------------------------------------------
# in-kernel helpers
# ----------------------------------------------------------------------------
def _erf_poly(x):
    # Abramowitz & Stegun 7.1.26 rational approximation of erf
    # (max abs error ~1.5e-7).  The reciprocal comes from the otherwise-idle
    # EUP slot (approx=True) plus ONE Newton-Raphson step on the VPU so the
    # 2e-3/2e-4 check against the f32 reference is preserved.
    p = 0.3275911
    a1, a2, a3, a4, a5 = (0.254829592, -0.284496736, 1.421413741,
                          -1.453152027, 1.061405429)
    ax = jnp.abs(x)
    d = 1.0 + p * ax
    t = pl.reciprocal(d, approx=True)
    t = t * (2.0 - d * t)                      # one NR refinement step
    poly = ((((a5 * t + a4) * t + a3) * t + a2) * t + a1) * t
    y = 1.0 - poly * jnp.exp(-ax * ax)
    return jnp.where(x >= 0, y, -y)


def _gelu_exact(x):
    # nn.GELU() default = erf formulation.
    return 0.5 * x * (1.0 + _erf_poly(x * (1.0 / math.sqrt(2.0))))


# ----------------------------------------------------------------------------
# fused Stage kernel: one invocation == the whole Stage (all Blocks unrolled)
# ----------------------------------------------------------------------------
def _make_stage_kernel(num_blocks, k, B, M, N, D):
    BM, ND = B * M, N * D
    pad = k // 2
    var_shifts = _active_var_shifts(B, M)      # pruned sublane shifts
    A = len(var_shifts)

    # jnp.roll semantics: out[i] = in[(i - s) % n]; pltpu.roll matches and
    # lowers to a single XLU vrot (lane axis=1, sublane axis=0).
    def lroll(v, s):
        s = s % ND
        return v if s == 0 else pltpu.roll(v, s, axis=1)

    def sroll(v, s):
        s = s % BM
        return v if s == 0 else pltpu.roll(v, s, axis=0)

    def kernel(x_ref, coef_ref, bias_ref, o_ref):
        h = x_ref[...]                                      # (BM, ND)

        for blk in range(num_blocks):                       # fully unrolled
            # --- dw + norm1 + norm (both BatchNorms folded into the conv) ---
            # tap j reads x at d + j - pad; the zero-padding boundary mask is
            # folded into coef so no in-kernel masking is needed.
            y = bias_ref[blk, 0]
            for j in range(k):
                y = y + coef_ref[blk, j] * lroll(h, pad - j)

            # --- ffnpw1 -> GELU -> ffnpw2 : 1x1 conv, groups=nvars ----------
            # (mix over the patch axis; patches are lane blocks of width D)
            def patch_mix(z, base, bidx):
                out = bias_ref[blk, bidx]
                for t in range(N):
                    out = out + coef_ref[blk, base + t] * lroll(z, t * D)
                return out

            y = patch_mix(y, k, 1)
            y = _gelu_exact(y)
            y = patch_mix(y, k + N, 2)

            # --- ffn1pw1 -> GELU -> ffn1pw2 : 1x1 conv, groups=patchnum -----
            # (mix over the nvars axis = sublane rolls; batch-crossing terms
            #  are zeroed in the coefficients; dead shifts pruned statically)
            def var_mix(z, base, bidx):
                out = bias_ref[blk, bidx]
                for idx, s in enumerate(var_shifts):
                    out = out + coef_ref[blk, base + idx] * sroll(z, s)
                return out

            z = var_mix(y, k + 2 * N, 3)
            z = _gelu_exact(z)
            z = var_mix(z, k + 2 * N + A, 4)

            # --- residual (Dropout identity in eval) ------------------------
            h = h + z

        o_ref[...] = h                                      # single unmasked store

    return kernel


def stage_forward(x, coef, bias):
    """Fused Stage.forward: one pallas_call, no grid, all Blocks unrolled."""
    B, M, N, D = x.shape
    BM, ND = B * M, N * D
    num_blocks, T = coef.shape[0], coef.shape[1]
    A = len(_active_var_shifts(B, M))
    k = T - 2 * N - 2 * A                       # number of depthwise taps

    kernel = _make_stage_kernel(num_blocks, k, B, M, N, D)
    out2 = pl.pallas_call(
        kernel,
        out_shape=jax.ShapeDtypeStruct((BM, ND), x.dtype),
        # No grid / BlockSpecs: x, coef and bias are small enough to sit fully
        # resident in VMEM, so the whole Stage runs in a single step with zero
        # per-block grid overhead and no HBM round-trips for the activation.
    )(x.reshape(BM, ND), coef, bias)
    return out2.reshape(B, M, N, D)


# ----------------------------------------------------------------------------
# one-time parameter preparation (hoisted out of the forward path)
# ----------------------------------------------------------------------------
def prepare_stage_params(block_params, B, M, N, D):
    """Fold BNs into the depthwise conv, pre-expand every per-channel
    weight/bias to the lane-dense (B*M, N*D) layout, prune structurally-zero
    var-mix taps, and pack everything into two stacked tensors:
    coef (nb, T, BM, ND) and bias (nb, 5, BM, ND)."""
    BM, ND = B * M, N * D
    k = block_params[0]["dw_w"].shape[-1]
    pad = k // 2
    f32 = jnp.float32
    var_shifts = _active_var_shifts(B, M)

    d_idx = jnp.arange(ND) % D                  # lane -> d within a patch
    n_idx = jnp.arange(ND) // D                 # lane -> patch index n
    r_idx = jnp.arange(BM)
    i_row = r_idx % M                           # row -> m (or output var i)
    b_row = r_idx // M                          # row -> batch index b

    def expand_mn(a):                           # (M, N) -> (BM, ND)
        return jnp.tile(jnp.repeat(a, D, axis=1), (B, 1))

    coefs, biases = [], []
    for p in block_params:
        # fold both eval-mode BatchNorms into a per-(m,n) scale/shift ...
        s1 = p["g1"] / jnp.sqrt(p["v1"] + BN_EPS)           # (M, N)
        t1 = p["b1"] - p["m1"] * s1
        s0 = p["g0"] / jnp.sqrt(p["v0"] + BN_EPS)           # (N,)
        t0 = p["b0"] - p["m0"] * s0
        sc = s1 * s0[None, :]
        sh = t1 * s0[None, :] + t0[None, :]
        # ... and fold that into the depthwise conv weights/bias
        dw_w = p["dw_w"] * sc[:, :, None]                   # (M, N, k)
        dw_b = p["dw_b"] * sc + sh                          # (M, N)

        c = []
        # depthwise taps: kernel uses lroll(x, pad - j); mask the lanes whose
        # source d + j - pad falls outside [0, D) (conv zero padding)
        for j in range(k):
            valid = ((d_idx + (j - pad) >= 0) & (d_idx + (j - pad) < D))
            c.append(expand_mn(dw_w[:, :, j]) * valid.astype(f32)[None, :])
        # patch mixes (ffnpw1/2): kernel rolls by t*D lanes, so the tap-t
        # coefficient at output patch i is W[m, i, (i - t) % N]
        arangeN = jnp.arange(N)
        for W in (p["w1"], p["w2"]):                        # (M, N, N)
            for t in range(N):
                src = (arangeN - t) % N
                c.append(expand_mn(W[:, arangeN, src]))
        # var mixes (ffn1pw1/2): kernel rolls by s sublanes; rolls crossing a
        # batch boundary are zeroed; all-dead shifts are pruned entirely
        for V in (p["u1"], p["u2"]):                        # (N, M, M)
            for s in var_shifts:
                src = (r_idx - s) % BM
                m_src = src % M
                same_b = (src // M) == b_row
                vals = V[n_idx[None, :], i_row[:, None], m_src[:, None]]
                c.append(jnp.where(same_b[:, None], vals, 0.0))
        coefs.append(jnp.stack(c))                          # (T, BM, ND)

        biases.append(jnp.stack([
            expand_mn(dw_b),                                # dw (+BN) bias
            expand_mn(p["bw1"]),                            # ffnpw1 bias
            expand_mn(p["bw2"]),                            # ffnpw2 bias
            expand_mn(p["cu1"].T),                          # ffn1pw1 bias
            expand_mn(p["cu2"].T),                          # ffn1pw2 bias
        ]))

    # TODO(synk): optionally return bf16 here (halves the parameter DMA,
    # mainly a win on v5e); kept f32 to hold the 2e-3/2e-4 check vs f32 ref.
    return jnp.stack(coefs).astype(f32), jnp.stack(biases).astype(f32)


# ----------------------------------------------------------------------------
# pure-JAX reference (mirrors the PyTorch graph) for a correctness check
# ----------------------------------------------------------------------------
def _block_ref(x, p):
    B, M, N, D = x.shape
    k = p["dw_w"].shape[-1]
    pad = k // 2

    xc = x.reshape(B, M * N, D)
    w = p["dw_w"].reshape(M * N, 1, k)
    y = lax.conv_general_dilated(
        xc, w, window_strides=(1,), padding=[(pad, pad)],
        feature_group_count=M * N,
        dimension_numbers=("NCH", "OIH", "NCH")) + p["dw_b"].reshape(1, M * N, 1)

    def bn(z, g, b, m, v):
        return ((z - m.reshape(1, -1, 1)) / jnp.sqrt(v.reshape(1, -1, 1) + BN_EPS)
                * g.reshape(1, -1, 1) + b.reshape(1, -1, 1))

    y = bn(y, p["g1"], p["b1"], p["m1"], p["v1"])
    y = y.reshape(B * M, N, D)
    y = bn(y, p["g0"], p["b0"], p["m0"], p["v0"])
    y = y.reshape(B, M, N, D)

    gelu = lambda z: jax.nn.gelu(z, approximate=False)
    y = jnp.einsum("mij,bmjd->bmid", p["w1"], y) + p["bw1"][None, :, :, None]
    y = gelu(y)
    y = jnp.einsum("mij,bmjd->bmid", p["w2"], y) + p["bw2"][None, :, :, None]

    z = jnp.transpose(y, (0, 2, 1, 3))
    z = jnp.einsum("nij,bnjd->bnid", p["u1"], z) + p["cu1"][None, :, :, None]
    z = gelu(z)
    z = jnp.einsum("nij,bnjd->bnid", p["u2"], z) + p["cu2"][None, :, :, None]
    z = jnp.transpose(z, (0, 2, 1, 3))
    return x + z


def stage_ref(x, block_params):
    for p in block_params:
        x = _block_ref(x, p)
    return x


# ----------------------------------------------------------------------------
# deterministic parameter initialization (synthetic, no checkpoint loads)
# ----------------------------------------------------------------------------
def init_block_params(key, M, N, small_size):
    ks = jax.random.split(key, 18)
    f32 = jnp.float32
    nrm = lambda kk, shape, s: s * jax.random.normal(kk, shape, dtype=f32)
    uni = lambda kk, shape: jax.random.uniform(kk, shape, dtype=f32,
                                               minval=0.5, maxval=1.5)
    return dict(
        # dw : Conv1d(M*N, M*N, small_size, groups=M*N) weight (M*N,1,k) -> (M,N,k)
        dw_w=nrm(ks[0], (M, N, small_size), 0.3),
        dw_b=nrm(ks[1], (M, N), 0.1),
        # norm1 : BatchNorm1d(M*N)  (gamma, beta, running_mean, running_var)
        g1=1.0 + nrm(ks[2], (M, N), 0.1), b1=nrm(ks[3], (M, N), 0.1),
        m1=nrm(ks[4], (M, N), 0.1), v1=uni(ks[5], (M, N)),
        # norm : BatchNorm1d(N)
        g0=1.0 + nrm(ks[6], (N,), 0.1), b0=nrm(ks[7], (N,), 0.1),
        m0=nrm(ks[8], (N,), 0.1), v0=uni(ks[9], (N,)),
        # ffnpw1/2 : Conv1d(M*N, M*N, 1, groups=nvars=M) weight (M*N,N,1) -> (M,N,N)
        w1=nrm(ks[10], (M, N, N), 0.2), bw1=nrm(ks[11], (M, N), 0.1),
        w2=nrm(ks[12], (M, N, N), 0.2), bw2=nrm(ks[13], (M, N), 0.1),
        # ffn1pw1/2 : Conv1d(M*N, M*N, 1, groups=patchnum=N) weight (N*M,M,1) -> (N,M,M)
        u1=nrm(ks[14], (N, M, M), 0.2), cu1=nrm(ks[15], (N, M), 0.1),
        u2=nrm(ks[16], (N, M, M), 0.2), cu2=nrm(ks[17], (N, M), 0.1),
    )


if __name__ == "__main__":
    key = jax.random.PRNGKey(0)
    B, M, N, D = 2, 4, 8, 16          # batch, nvars, patchnum, dmodel
    small_size = 5                    # odd -> 'same' length depthwise conv
    num_blocks = 2                    # Stage(num_blocks=2)

    kx, kp = jax.random.split(key)
    x = jax.random.normal(kx, (B, M, N, D), dtype=jnp.float32)

    block_params = [init_block_params(kb, M, N, small_size)
                    for kb in jax.random.split(kp, num_blocks)]

    # one-time prep (BN folding, layout expansion, pruning, packing) --
    # NOT in the forward path
    coef, bias = prepare_stage_params(block_params, B, M, N, D)
    coef = jax.device_put(coef)
    bias = jax.device_put(bias)

    fwd = jax.jit(stage_forward)
    out = jax.block_until_ready(fwd(x, coef, bias))
    ref = jax.block_until_ready(stage_ref(x, block_params))

    assert out.shape == (B, M, N, D)
    max_err = float(jnp.max(jnp.abs(out - ref)))
    assert bool(jnp.allclose(out, ref, rtol=2e-3, atol=2e-4)), max_err
    print("KERNEL_OK")
</pallas_src>

<mosaic_0001>
module attributes {stable_mosaic.version = 11 : i64} {
  func.func @kernel(%arg0: memref<8x128xf32, #tpu.memory_space<vmem>>, %arg1: memref<2x35x8x128xf32, #tpu.memory_space<vmem>>, %arg2: memref<2x5x8x128xf32, #tpu.memory_space<vmem>>, %arg3: memref<8x128xf32, #tpu.memory_space<vmem>>) attributes {dimension_semantics = [], scalar_prefetch = 0 : i64, scratch_operands = 0 : i64, tpu.core_type = #tpu.core_type<tc>} {
    %c0 = arith.constant 0 : index
    %c0_0 = arith.constant 0 : index
    %0 = vector.load %arg0[%c0, %c0_0] : memref<8x128xf32, #tpu.memory_space<vmem>>, vector<8x128xf32>
    %c0_1 = arith.constant 0 : index
    %c0_2 = arith.constant 0 : index
    %c0_3 = arith.constant 0 : index
    %c0_4 = arith.constant 0 : index
    %1 = vector.load %arg2[%c0_1, %c0_2, %c0_3, %c0_4] : memref<2x5x8x128xf32, #tpu.memory_space<vmem>>, vector<1x1x8x128xf32>
    %2 = vector.shape_cast %1 : vector<1x1x8x128xf32> to vector<8x128xf32>
    %c0_5 = arith.constant 0 : index
    %c0_6 = arith.constant 0 : index
    %c0_7 = arith.constant 0 : index
    %c0_8 = arith.constant 0 : index
    %3 = vector.load %arg1[%c0_5, %c0_6, %c0_7, %c0_8] : memref<2x35x8x128xf32, #tpu.memory_space<vmem>>, vector<1x1x8x128xf32>
    %4 = vector.shape_cast %3 : vector<1x1x8x128xf32> to vector<8x128xf32>
    %c2_i32 = arith.constant 2 : i32
    %5 = tpu.dynamic_rotate %0 by %c2_i32 dim 1 : vector<8x128xf32>, i32 -> vector<8x128xf32>
    %6 = arith.mulf %4, %5 : vector<8x128xf32>
    %7 = arith.addf %2, %6 : vector<8x128xf32>
    %c0_9 = arith.constant 0 : index
    %c1 = arith.constant 1 : index
    %c0_10 = arith.constant 0 : index
    %c0_11 = arith.constant 0 : index
    %8 = vector.load %arg1[%c0_9, %c1, %c0_10, %c0_11] : memref<2x35x8x128xf32, #tpu.memory_space<vmem>>, vector<1x1x8x128xf32>
    %9 = vector.shape_cast %8 : vector<1x1x8x128xf32> to vector<8x128xf32>
    %c1_i32 = arith.constant 1 : i32
    %10 = tpu.dynamic_rotate %0 by %c1_i32 dim 1 : vector<8x128xf32>, i32 -> vector<8x128xf32>
    %11 = arith.mulf %9, %10 : vector<8x128xf32>
    %12 = arith.addf %7, %11 : vector<8x128xf32>
    %c0_12 = arith.constant 0 : index
    %c2 = arith.constant 2 : index
    %c0_13 = arith.constant 0 : index
    %c0_14 = arith.constant 0 : index
    %13 = vector.load %arg1[%c0_12, %c2, %c0_13, %c0_14] : memref<2x35x8x128xf32, #tpu.memory_space<vmem>>, vector<1x1x8x128xf32>
    %14 = vector.shape_cast %13 : vector<1x1x8x128xf32> to vector<8x128xf32>
    %15 = arith.mulf %14, %0 : vector<8x128xf32>
    %16 = arith.addf %12, %15 : vector<8x128xf32>
    %c0_15 = arith.constant 0 : index
    %c3 = arith.constant 3 : index
    %c0_16 = arith.constant 0 : index
    %c0_17 = arith.constant 0 : index
    %17 = vector.load %arg1[%c0_15, %c3, %c0_16, %c0_17] : memref<2x35x8x128xf32, #tpu.memory_space<vmem>>, vector<1x1x8x128xf32>
    %18 = vector.shape_cast %17 : vector<1x1x8x128xf32> to vector<8x128xf32>
    %c127_i32 = arith.constant 127 : i32
    %19 = tpu.dynamic_rotate %0 by %c127_i32 dim 1 : vector<8x128xf32>, i32 -> vector<8x128xf32>
    %20 = arith.mulf %18, %19 : vector<8x128xf32>
    %21 = arith.addf %16, %20 : vector<8x128xf32>
    %c0_18 = arith.constant 0 : index
    %c4 = arith.constant 4 : index
    %c0_19 = arith.constant 0 : index
    %c0_20 = arith.constant 0 : index
    %22 = vector.load %arg1[%c0_18, %c4, %c0_19, %c0_20] : memref<2x35x8x128xf32, #tpu.memory_space<vmem>>, vector<1x1x8x128xf32>
    %23 = vector.shape_cast %22 : vector<1x1x8x128xf32> to vector<8x128xf32>
    %c126_i32 = arith.constant 126 : i32
    %24 = tpu.dynamic_rotate %0 by %c126_i32 dim 1 : vector<8x128xf32>, i32 -> vector<8x128xf32>
    %25 = arith.mulf %23, %24 : vector<8x128xf32>
    %26 = arith.addf %21, %25 : vector<8x128xf32>
    %c0_21 = arith.constant 0 : index
    %c1_22 = arith.constant 1 : index
    %c0_23 = arith.constant 0 : index
    %c0_24 = arith.constant 0 : index
    %27 = vector.load %arg2[%c0_21, %c1_22, %c0_23, %c0_24] : memref<2x5x8x128xf32, #tpu.memory_space<vmem>>, vector<1x1x8x128xf32>
    %28 = vector.shape_cast %27 : vector<1x1x8x128xf32> to vector<8x128xf32>
    %c0_25 = arith.constant 0 : index
    %c5 = arith.constant 5 : index
    %c0_26 = arith.constant 0 : index
    %c0_27 = arith.constant 0 : index
    %29 = vector.load %arg1[%c0_25, %c5, %c0_26, %c0_27] : memref<2x35x8x128xf32, #tpu.memory_space<vmem>>, vector<1x1x8x128xf32>
    %30 = vector.shape_cast %29 : vector<1x1x8x128xf32> to vector<8x128xf32>
    %31 = arith.mulf %30, %26 : vector<8x128xf32>
    %32 = arith.addf %28, %31 : vector<8x128xf32>
    %c0_28 = arith.constant 0 : index
    %c6 = arith.constant 6 : index
    %c0_29 = arith.constant 0 : index
    %c0_30 = arith.constant 0 : index
    %33 = vector.load %arg1[%c0_28, %c6, %c0_29, %c0_30] : memref<2x35x8x128xf32, #tpu.memory_space<vmem>>, vector<1x1x8x128xf32>
    %34 = vector.shape_cast %33 : vector<1x1x8x128xf32> to vector<8x128xf32>
    %c16_i32 = arith.constant 16 : i32
    %35 = tpu.dynamic_rotate %26 by %c16_i32 dim 1 : vector<8x128xf32>, i32 -> vector<8x128xf32>
    %36 = arith.mulf %34, %35 : vector<8x128xf32>
    %37 = arith.addf %32, %36 : vector<8x128xf32>
    %c0_31 = arith.constant 0 : index
    %c7 = arith.constant 7 : index
    %c0_32 = arith.constant 0 : index
    %c0_33 = arith.constant 0 : index
    %38 = vector.load %arg1[%c0_31, %c7, %c0_32, %c0_33] : memref<2x35x8x128xf32, #tpu.memory_space<vmem>>, vector<1x1x8x128xf32>
    %39 = vector.shape_cast %38 : vector<1x1x8x128xf32> to vector<8x128xf32>
    %c32_i32 = arith.constant 32 : i32
    %40 = tpu.dynamic_rotate %26 by %c32_i32 dim 1 : vector<8x128xf32>, i32 -> vector<8x128xf32>
    %41 = arith.mulf %39, %40 : vector<8x128xf32>
    %42 = arith.addf %37, %41 : vector<8x128xf32>
    %c0_34 = arith.constant 0 : index
    %c8 = arith.constant 8 : index
    %c0_35 = arith.constant 0 : index
    %c0_36 = arith.constant 0 : index
    %43 = vector.load %arg1[%c0_34, %c8, %c0_35, %c0_36] : memref<2x35x8x128xf32, #tpu.memory_space<vmem>>, vector<1x1x8x128xf32>
    %44 = vector.shape_cast %43 : vector<1x1x8x128xf32> to vector<8x128xf32>
    %c48_i32 = arith.constant 48 : i32
    %45 = tpu.dynamic_rotate %26 by %c48_i32 dim 1 : vector<8x128xf32>, i32 -> vector<8x128xf32>
    %46 = arith.mulf %44, %45 : vector<8x128xf32>
    %47 = arith.addf %42, %46 : vector<8x128xf32>
    %c0_37 = arith.constant 0 : index
    %c9 = arith.constant 9 : index
    %c0_38 = arith.constant 0 : index
    %c0_39 = arith.constant 0 : index
    %48 = vector.load %arg1[%c0_37, %c9, %c0_38, %c0_39] : memref<2x35x8x128xf32, #tpu.memory_space<vmem>>, vector<1x1x8x128xf32>
    %49 = vector.shape_cast %48 : vector<1x1x8x128xf32> to vector<8x128xf32>
    %c64_i32 = arith.constant 64 : i32
    %50 = tpu.dynamic_rotate %26 by %c64_i32 dim 1 : vector<8x128xf32>, i32 -> vector<8x128xf32>
    %51 = arith.mulf %49, %50 : vector<8x128xf32>
    %52 = arith.addf %47, %51 : vector<8x128xf32>
    %c0_40 = arith.constant 0 : index
    %c10 = arith.constant 10 : index
    %c0_41 = arith.constant 0 : index
    %c0_42 = arith.constant 0 : index
    %53 = vector.load %arg1[%c0_40, %c10, %c0_41, %c0_42] : memref<2x35x8x128xf32, #tpu.memory_space<vmem>>, vector<1x1x8x128xf32>
    %54 = vector.shape_cast %53 : vector<1x1x8x128xf32> to vector<8x128xf32>
    %c80_i32 = arith.constant 80 : i32
    %55 = tpu.dynamic_rotate %26 by %c80_i32 dim 1 : vector<8x128xf32>, i32 -> vector<8x128xf32>
    %56 = arith.mulf %54, %55 : vector<8x128xf32>
    %57 = arith.addf %52, %56 : vector<8x128xf32>
    %c0_43 = arith.constant 0 : index
    %c11 = arith.constant 11 : index
    %c0_44 = arith.constant 0 : index
    %c0_45 = arith.constant 0 : index
    %58 = vector.load %arg1[%c0_43, %c11, %c0_44, %c0_45] : memref<2x35x8x128xf32, #tpu.memory_space<vmem>>, vector<1x1x8x128xf32>
    %59 = vector.shape_cast %58 : vector<1x1x8x128xf32> to vector<8x128xf32>
    %c96_i32 = arith.constant 96 : i32
    %60 = tpu.dynamic_rotate %26 by %c96_i32 dim 1 : vector<8x128xf32>, i32 -> vector<8x128xf32>
    %61 = arith.mulf %59, %60 : vector<8x128xf32>
    %62 = arith.addf %57, %61 : vector<8x128xf32>
    %c0_46 = arith.constant 0 : index
    %c12 = arith.constant 12 : index
    %c0_47 = arith.constant 0 : index
    %c0_48 = arith.constant 0 : index
    %63 = vector.load %arg1[%c0_46, %c12, %c0_47, %c0_48] : memref<2x35x8x128xf32, #tpu.memory_space<vmem>>, vector<1x1x8x128xf32>
    %64 = vector.shape_cast %63 : vector<1x1x8x128xf32> to vector<8x128xf32>
    %c112_i32 = arith.constant 112 : i32
    %65 = tpu.dynamic_rotate %26 by %c112_i32 dim 1 : vector<8x128xf32>, i32 -> vector<8x128xf32>
    %66 = arith.mulf %64, %65 : vector<8x128xf32>
    %67 = arith.addf %62, %66 : vector<8x128xf32>
    %cst = arith.constant 5.000000e-01 : f32
    %68 = vector.broadcast %cst : f32 to vector<8x128xf32>
    %69 = arith.mulf %68, %67 : vector<8x128xf32>
    %cst_49 = arith.constant 0.707106769 : f32
    %70 = vector.broadcast %cst_49 : f32 to vector<8x128xf32>
    %71 = arith.mulf %67, %70 : vector<8x128xf32>
    %72 = math.absf %71 : vector<8x128xf32>
    %cst_50 = arith.constant 0.327591091 : f32
    %73 = vector.broadcast %cst_50 : f32 to vector<8x128xf32>
    %74 = arith.mulf %73, %72 : vector<8x128xf32>
    %cst_51 = arith.constant 1.000000e+00 : f32
    %75 = vector.broadcast %cst_51 : f32 to vector<8x128xf32>
    %76 = arith.addf %75, %74 : vector<8x128xf32>
    %77 = tpu.reciprocal %76 {approx = true} : vector<8x128xf32> -> vector<8x128xf32>
    %78 = arith.mulf %76, %77 : vector<8x128xf32>
    %cst_52 = arith.constant 2.000000e+00 : f32
    %79 = vector.broadcast %cst_52 : f32 to vector<8x128xf32>
    %80 = arith.subf %79, %78 : vector<8x128xf32>
    %81 = arith.mulf %77, %80 : vector<8x128xf32>
    %cst_53 = arith.constant 1.06140542 : f32
    %82 = vector.broadcast %cst_53 : f32 to vector<8x128xf32>
    %83 = arith.mulf %82, %81 : vector<8x128xf32>
    %cst_54 = arith.constant -1.45315206 : f32
    %84 = vector.broadcast %cst_54 : f32 to vector<8x128xf32>
    %85 = arith.addf %83, %84 : vector<8x128xf32>
    %86 = arith.mulf %85, %81 : vector<8x128xf32>
    %cst_55 = arith.constant 1.42141378 : f32
    %87 = vector.broadcast %cst_55 : f32 to vector<8x128xf32>
    %88 = arith.addf %86, %87 : vector<8x128xf32>
    %89 = arith.mulf %88, %81 : vector<8x128xf32>
    %cst_56 = arith.constant -0.284496725 : f32
    %90 = vector.broadcast %cst_56 : f32 to vector<8x128xf32>
    %91 = arith.addf %89, %90 : vector<8x128xf32>
    %92 = arith.mulf %91, %81 : vector<8x128xf32>
    %cst_57 = arith.constant 0.254829586 : f32
    %93 = vector.broadcast %cst_57 : f32 to vector<8x128xf32>
    %94 = arith.addf %92, %93 : vector<8x128xf32>
    %95 = arith.mulf %94, %81 : vector<8x128xf32>
    %cst_58 = arith.constant 0.000000e+00 : f32
    %96 = vector.broadcast %cst_58 : f32 to vector<8x128xf32>
    %97 = arith.subf %96, %72 : vector<8x128xf32>
    %98 = arith.mulf %97, %72 : vector<8x128xf32>
    %99 = math.exp %98 : vector<8x128xf32>
    %100 = arith.mulf %95, %99 : vector<8x128xf32>
    %cst_59 = arith.constant 1.000000e+00 : f32
    %101 = vector.broadcast %cst_59 : f32 to vector<8x128xf32>
    %102 = arith.subf %101, %100 : vector<8x128xf32>
    %cst_60 = arith.constant 0.000000e+00 : f32
    %103 = vector.broadcast %cst_60 : f32 to vector<8x128xf32>
    %104 = arith.cmpf oge, %71, %103 : vector<8x128xf32>
    %cst_61 = arith.constant 0.000000e+00 : f32
    %105 = vector.broadcast %cst_61 : f32 to vector<8x128xf32>
    %106 = arith.subf %105, %102 : vector<8x128xf32>
    %107 = arith.select %104, %102, %106 : vector<8x128xi1>, vector<8x128xf32>
    %cst_62 = arith.constant 1.000000e+00 : f32
    %108 = vector.broadcast %cst_62 : f32 to vector<8x128xf32>
    %109 = arith.addf %108, %107 : vector<8x128xf32>
    %110 = arith.mulf %69, %109 : vector<8x128xf32>
    %c0_63 = arith.constant 0 : index
    %c2_64 = arith.constant 2 : index
    %c0_65 = arith.constant 0 : index
    %c0_66 = arith.constant 0 : index
    %111 = vector.load %arg2[%c0_63, %c2_64, %c0_65, %c0_66] : memref<2x5x8x128xf32, #tpu.memory_space<vmem>>, vector<1x1x8x128xf32>
    %112 = vector.shape_cast %111 : vector<1x1x8x128xf32> to vector<8x128xf32>
    %c0_67 = arith.constant 0 : index
    %c13 = arith.constant 13 : index
    %c0_68 = arith.constant 0 : index
    %c0_69 = arith.constant 0 : index
    %113 = vector.load %arg1[%c0_67, %c13, %c0_68, %c0_69] : memref<2x35x8x128xf32, #tpu.memory_space<vmem>>, vector<1x1x8x128xf32>
    %114 = vector.shape_cast %113 : vector<1x1x8x128xf32> to vector<8x128xf32>
    %115 = arith.mulf %114, %110 : vector<8x128xf32>
    %116 = arith.addf %112, %115 : vector<8x128xf32>
    %c0_70 = arith.constant 0 : index
    %c14 = arith.constant 14 : index
    %c0_71 = arith.constant 0 : index
    %c0_72 = arith.constant 0 : index
    %117 = vector.load %arg1[%c0_70, %c14, %c0_71, %c0_72] : memref<2x35x8x128xf32, #tpu.memory_space<vmem>>, vector<1x1x8x128xf32>
    %118 = vector.shape_cast %117 : vector<1x1x8x128xf32> to vector<8x128xf32>
    %c16_i32_73 = arith.constant 16 : i32
    %119 = tpu.dynamic_rotate %110 by %c16_i32_73 dim 1 : vector<8x128xf32>, i32 -> vector<8x128xf32>
    %120 = arith.mulf %118, %119 : vector<8x128xf32>
    %121 = arith.addf %116, %120 : vector<8x128xf32>
    %c0_74 = arith.constant 0 : index
    %c15 = arith.constant 15 : index
    %c0_75 = arith.constant 0 : index
    %c0_76 = arith.constant 0 : index
    %122 = vector.load %arg1[%c0_74, %c15, %c0_75, %c0_76] : memref<2x35x8x128xf32, #tpu.memory_space<vmem>>, vector<1x1x8x128xf32>
    %123 = vector.shape_cast %122 : vector<1x1x8x128xf32> to vector<8x128xf32>
    %c32_i32_77 = arith.constant 32 : i32
    %124 = tpu.dynamic_rotate %110 by %c32_i32_77 dim 1 : vector<8x128xf32>, i32 -> vector<8x128xf32>
    %125 = arith.mulf %123, %124 : vector<8x128xf32>
    %126 = arith.addf %121, %125 : vector<8x128xf32>
    %c0_78 = arith.constant 0 : index
    %c16 = arith.constant 16 : index
    %c0_79 = arith.constant 0 : index
    %c0_80 = arith.constant 0 : index
    %127 = vector.load %arg1[%c0_78, %c16, %c0_79, %c0_80] : memref<2x35x8x128xf32, #tpu.memory_space<vmem>>, vector<1x1x8x128xf32>
    %128 = vector.shape_cast %127 : vector<1x1x8x128xf32> to vector<8x128xf32>
    %c48_i32_81 = arith.constant 48 : i32
    %129 = tpu.dynamic_rotate %110 by %c48_i32_81 dim 1 : vector<8x128xf32>, i32 -> vector<8x128xf32>
    %130 = arith.mulf %128, %129 : vector<8x128xf32>
    %131 = arith.addf %126, %130 : vector<8x128xf32>
    %c0_82 = arith.constant 0 : index
    %c17 = arith.constant 17 : index
    %c0_83 = arith.constant 0 : index
    %c0_84 = arith.constant 0 : index
    %132 = vector.load %arg1[%c0_82, %c17, %c0_83, %c0_84] : memref<2x35x8x128xf32, #tpu.memory_space<vmem>>, vector<1x1x8x128xf32>
    %133 = vector.shape_cast %132 : vector<1x1x8x128xf32> to vector<8x128xf32>
    %c64_i32_85 = arith.constant 64 : i32
    %134 = tpu.dynamic_rotate %110 by %c64_i32_85 dim 1 : vector<8x128xf32>, i32 -> vector<8x128xf32>
    %135 = arith.mulf %133, %134 : vector<8x128xf32>
    %136 = arith.addf %131, %135 : vector<8x128xf32>
    %c0_86 = arith.constant 0 : index
    %c18 = arith.constant 18 : index
    %c0_87 = arith.constant 0 : index
    %c0_88 = arith.constant 0 : index
    %137 = vector.load %arg1[%c0_86, %c18, %c0_87, %c0_88] : memref<2x35x8x128xf32, #tpu.memory_space<vmem>>, vector<1x1x8x128xf32>
    %138 = vector.shape_cast %137 : vector<1x1x8x128xf32> to vector<8x128xf32>
    %c80_i32_89 = arith.constant 80 : i32
    %139 = tpu.dynamic_rotate %110 by %c80_i32_89 dim 1 : vector<8x128xf32>, i32 -> vector<8x128xf32>
    %140 = arith.mulf %138, %139 : vector<8x128xf32>
    %141 = arith.addf %136, %140 : vector<8x128xf32>
    %c0_90 = arith.constant 0 : index
    %c19 = arith.constant 19 : index
    %c0_91 = arith.constant 0 : index
    %c0_92 = arith.constant 0 : index
    %142 = vector.load %arg1[%c0_90, %c19, %c0_91, %c0_92] : memref<2x35x8x128xf32, #tpu.memory_space<vmem>>, vector<1x1x8x128xf32>
    %143 = vector.shape_cast %142 : vector<1x1x8x128xf32> to vector<8x128xf32>
    %c96_i32_93 = arith.constant 96 : i32
    %144 = tpu.dynamic_rotate %110 by %c96_i32_93 dim 1 : vector<8x128xf32>, i32 -> vector<8x128xf32>
    %145 = arith.mulf %143, %144 : vector<8x128xf32>
    %146 = arith.addf %141, %145 : vector<8x128xf32>
    %c0_94 = arith.constant 0 : index
    %c20 = arith.constant 20 : index
    %c0_95 = arith.constant 0 : index
    %c0_96 = arith.constant 0 : index
    %147 = vector.load %arg1[%c0_94, %c20, %c0_95, %c0_96] : memref<2x35x8x128xf32, #tpu.memory_space<vmem>>, vector<1x1x8x128xf32>
    %148 = vector.shape_cast %147 : vector<1x1x8x128xf32> to vector<8x128xf32>
    %c112_i32_97 = arith.constant 112 : i32
    %149 = tpu.dynamic_rotate %110 by %c112_i32_97 dim 1 : vector<8x128xf32>, i32 -> vector<8x128xf32>
    %150 = arith.mulf %148, %149 : vector<8x128xf32>
    %151 = arith.addf %146, %150 : vector<8x128xf32>
    %c0_98 = arith.constant 0 : index
    %c3_99 = arith.constant 3 : index
    %c0_100 = arith.constant 0 : index
    %c0_101 = arith.constant 0 : index
    %152 = vector.load %arg2[%c0_98, %c3_99, %c0_100, %c0_101] : memref<2x5x8x128xf32, #tpu.memory_space<vmem>>, vector<1x1x8x128xf32>
    %153 = vector.shape_cast %152 : vector<1x1x8x128xf32> to vector<8x128xf32>
    %c0_102 = arith.constant 0 : index
    %c21 = arith.constant 21 : index
    %c0_103 = arith.constant 0 : index
    %c0_104 = arith.constant 0 : index
    %154 = vector.load %arg1[%c0_102, %c21, %c0_103, %c0_104] : memref<2x35x8x128xf32, #tpu.memory_space<vmem>>, vector<1x1x8x128xf32>
    %155 = vector.shape_cast %154 : vector<1x1x8x128xf32> to vector<8x128xf32>
    %156 = arith.mulf %155, %151 : vector<8x128xf32>
    %157 = arith.addf %153, %156 : vector<8x128xf32>
    %c0_105 = arith.constant 0 : index
    %c22 = arith.constant 22 : index
    %c0_106 = arith.constant 0 : index
    %c0_107 = arith.constant 0 : index
    %158 = vector.load %arg1[%c0_105, %c22, %c0_106, %c0_107] : memref<2x35x8x128xf32, #tpu.memory_space<vmem>>, vector<1x1x8x128xf32>
    %159 = vector.shape_cast %158 : vector<1x1x8x128xf32> to vector<8x128xf32>
    %c1_i32_108 = arith.constant 1 : i32
    %160 = tpu.dynamic_rotate %151 by %c1_i32_108 dim 0 : vector<8x128xf32>, i32 -> vector<8x128xf32>
    %161 = arith.mulf %159, %160 : vector<8x128xf32>
    %162 = arith.addf %157, %161 : vector<8x128xf32>
    %c0_109 = arith.constant 0 : index
    %c23 = arith.constant 23 : index
    %c0_110 = arith.constant 0 : index
    %c0_111 = arith.constant 0 : index
    %163 = vector.load %arg1[%c0_109, %c23, %c0_110, %c0_111] : memref<2x35x8x128xf32, #tpu.memory_space<vmem>>, vector<1x1x8x128xf32>
    %164 = vector.shape_cast %163 : vector<1x1x8x128xf32> to vector<8x128xf32>
    %c2_i32_112 = arith.constant 2 : i32
    %165 = tpu.dynamic_rotate %151 by %c2_i32_112 dim 0 : vector<8x128xf32>, i32 -> vector<8x128xf32>
    %166 = arith.mulf %164, %165 : vector<8x128xf32>
    %167 = arith.addf %162, %166 : vector<8x128xf32>
    %c0_113 = arith.constant 0 : index
    %c24 = arith.constant 24 : index
    %c0_114 = arith.constant 0 : index
    %c0_115 = arith.constant 0 : index
    %168 = vector.load %arg1[%c0_113, %c24, %c0_114, %c0_115] : memref<2x35x8x128xf32, #tpu.memory_space<vmem>>, vector<1x1x8x128xf32>
    %169 = vector.shape_cast %168 : vector<1x1x8x128xf32> to vector<8x128xf32>
    %c3_i32 = arith.constant 3 : i32
    %170 = tpu.dynamic_rotate %151 by %c3_i32 dim 0 : vector<8x128xf32>, i32 -> vector<8x128xf32>
    %171 = arith.mulf %169, %170 : vector<8x128xf32>
    %172 = arith.addf %167, %171 : vector<8x128xf32>
    %c0_116 = arith.constant 0 : index
    %c25 = arith.constant 25 : index
    %c0_117 = arith.constant 0 : index
    %c0_118 = arith.constant 0 : index
    %173 = vector.load %arg1[%c0_116, %c25, %c0_117, %c0_118] : memref<2x35x8x128xf32, #tpu.memory_space<vmem>>, vector<1x1x8x128xf32>
    %174 = vector.shape_cast %173 : vector<1x1x8x128xf32> to vector<8x128xf32>
    %c5_i32 = arith.constant 5 : i32
    %175 = tpu.dynamic_rotate %151 by %c5_i32 dim 0 : vector<8x128xf32>, i32 -> vector<8x128xf32>
    %176 = arith.mulf %174, %175 : vector<8x128xf32>
    %177 = arith.addf %172, %176 : vector<8x128xf32>
    %c0_119 = arith.constant 0 : index
    %c26 = arith.constant 26 : index
    %c0_120 = arith.constant 0 : index
    %c0_121 = arith.constant 0 : index
    %178 = vector.load %arg1[%c0_119, %c26, %c0_120, %c0_121] : memref<2x35x8x128xf32, #tpu.memory_space<vmem>>, vector<1x1x8x128xf32>
    %179 = vector.shape_cast %178 : vector<1x1x8x128xf32> to vector<8x128xf32>
    %c6_i32 = arith.constant 6 : i32
    %180 = tpu.dynamic_rotate %151 by %c6_i32 dim 0 : vector<8x128xf32>, i32 -> vector<8x128xf32>
    %181 = arith.mulf %179, %180 : vector<8x128xf32>
    %182 = arith.addf %177, %181 : vector<8x128xf32>
    %c0_122 = arith.constant 0 : index
    %c27 = arith.constant 27 : index
    %c0_123 = arith.constant 0 : index
    %c0_124 = arith.constant 0 : index
    %183 = vector.load %arg1[%c0_122, %c27, %c0_123, %c0_124] : memref<2x35x8x128xf32, #tpu.memory_space<vmem>>, vector<1x1x8x128xf32>
    %184 = vector.shape_cast %183 : vector<1x1x8x128xf32> to vector<8x128xf32>
    %c7_i32 = arith.constant 7 : i32
    %185 = tpu.dynamic_rotate %151 by %c7_i32 dim 0 : vector<8x128xf32>, i32 -> vector<8x128xf32>
    %186 = arith.mulf %184, %185 : vector<8x128xf32>
    %187 = arith.addf %182, %186 : vector<8x128xf32>
    %cst_125 = arith.constant 5.000000e-01 : f32
    %188 = vector.broadcast %cst_125 : f32 to vector<8x128xf32>
    %189 = arith.mulf %188, %187 : vector<8x128xf32>
    %cst_126 = arith.constant 0.707106769 : f32
    %190 = vector.broadcast %cst_126 : f32 to vector<8x128xf32>
    %191 = arith.mulf %187, %190 : vector<8x128xf32>
    %192 = math.absf %191 : vector<8x128xf32>
    %cst_127 = arith.constant 0.327591091 : f32
    %193 = vector.broadcast %cst_127 : f32 to vector<8x128xf32>
    %194 = arith.mulf %193, %192 : vector<8x128xf32>
    %cst_128 = arith.constant 1.000000e+00 : f32
    %195 = vector.broadcast %cst_128 : f32 to vector<8x128xf32>
    %196 = arith.addf %195, %194 : vector<8x128xf32>
    %197 = tpu.reciprocal %196 {approx = true} : vector<8x128xf32> -> vector<8x128xf32>
    %198 = arith.mulf %196, %197 : vector<8x128xf32>
    %cst_129 = arith.constant 2.000000e+00 : f32
    %199 = vector.broadcast %cst_129 : f32 to vector<8x128xf32>
    %200 = arith.subf %199, %198 : vector<8x128xf32>
    %201 = arith.mulf %197, %200 : vector<8x128xf32>
    %cst_130 = arith.constant 1.06140542 : f32
    %202 = vector.broadcast %cst_130 : f32 to vector<8x128xf32>
    %203 = arith.mulf %202, %201 : vector<8x128xf32>
    %cst_131 = arith.constant -1.45315206 : f32
    %204 = vector.broadcast %cst_131 : f32 to vector<8x128xf32>
    %205 = arith.addf %203, %204 : vector<8x128xf32>
    %206 = arith.mulf %205, %201 : vector<8x128xf32>
    %cst_132 = arith.constant 1.42141378 : f32
    %207 = vector.broadcast %cst_132 : f32 to vector<8x128xf32>
    %208 = arith.addf %206, %207 : vector<8x128xf32>
    %209 = arith.mulf %208, %201 : vector<8x128xf32>
    %cst_133 = arith.constant -0.284496725 : f32
    %210 = vector.broadcast %cst_133 : f32 to vector<8x128xf32>
    %211 = arith.addf %209, %210 : vector<8x128xf32>
    %212 = arith.mulf %211, %201 : vector<8x128xf32>
    %cst_134 = arith.constant 0.254829586 : f32
    %213 = vector.broadcast %cst_134 : f32 to vector<8x128xf32>
    %214 = arith.addf %212, %213 : vector<8x128xf32>
    %215 = arith.mulf %214, %201 : vector<8x128xf32>
    %cst_135 = arith.constant 0.000000e+00 : f32
    %216 = vector.broadcast %cst_135 : f32 to vector<8x128xf32>
    %217 = arith.subf %216, %192 : vector<8x128xf32>
    %218 = arith.mulf %217, %192 : vector<8x128xf32>
    %219 = math.exp %218 : vector<8x128xf32>
    %220 = arith.mulf %215, %219 : vector<8x128xf32>
    %cst_136 = arith.constant 1.000000e+00 : f32
    %221 = vector.broadcast %cst_136 : f32 to vector<8x128xf32>
    %222 = arith.subf %221, %220 : vector<8x128xf32>
    %cst_137 = arith.constant 0.000000e+00 : f32
    %223 = vector.broadcast %cst_137 : f32 to vector<8x128xf32>
    %224 = arith.cmpf oge, %191, %223 : vector<8x128xf32>
    %cst_138 = arith.constant 0.000000e+00 : f32
    %225 = vector.broadcast %cst_138 : f32 to vector<8x128xf32>
    %226 = arith.subf %225, %222 : vector<8x128xf32>
    %227 = arith.select %224, %222, %226 : vector<8x128xi1>, vector<8x128xf32>
    %cst_139 = arith.constant 1.000000e+00 : f32
    %228 = vector.broadcast %cst_139 : f32 to vector<8x128xf32>
    %229 = arith.addf %228, %227 : vector<8x128xf32>
    %230 = arith.mulf %189, %229 : vector<8x128xf32>
    %c0_140 = arith.constant 0 : index
    %c4_141 = arith.constant 4 : index
    %c0_142 = arith.constant 0 : index
    %c0_143 = arith.constant 0 : index
    %231 = vector.load %arg2[%c0_140, %c4_141, %c0_142, %c0_143] : memref<2x5x8x128xf32, #tpu.memory_space<vmem>>, vector<1x1x8x128xf32>
    %232 = vector.shape_cast %231 : vector<1x1x8x128xf32> to vector<8x128xf32>
    %c0_144 = arith.constant 0 : index
    %c28 = arith.constant 28 : index
    %c0_145 = arith.constant 0 : index
    %c0_146 = arith.constant 0 : index
    %233 = vector.load %arg1[%c0_144, %c28, %c0_145, %c0_146] : memref<2x35x8x128xf32, #tpu.memory_space<vmem>>, vector<1x1x8x128xf32>
    %234 = vector.shape_cast %233 : vector<1x1x8x128xf32> to vector<8x128xf32>
    %235 = arith.mulf %234, %230 : vector<8x128xf32>
    %236 = arith.addf %232, %235 : vector<8x128xf32>
    %c0_147 = arith.constant 0 : index
    %c29 = arith.constant 29 : index
    %c0_148 = arith.constant 0 : index
    %c0_149 = arith.constant 0 : index
    %237 = vector.load %arg1[%c0_147, %c29, %c0_148, %c0_149] : memref<2x35x8x128xf32, #tpu.memory_space<vmem>>, vector<1x1x8x128xf32>
    %238 = vector.shape_cast %237 : vector<1x1x8x128xf32> to vector<8x128xf32>
    %c1_i32_150 = arith.constant 1 : i32
    %239 = tpu.dynamic_rotate %230 by %c1_i32_150 dim 0 : vector<8x128xf32>, i32 -> vector<8x128xf32>
    %240 = arith.mulf %238, %239 : vector<8x128xf32>
    %241 = arith.addf %236, %240 : vector<8x128xf32>
    %c0_151 = arith.constant 0 : index
    %c30 = arith.constant 30 : index
    %c0_152 = arith.constant 0 : index
    %c0_153 = arith.constant 0 : index
    %242 = vector.load %arg1[%c0_151, %c30, %c0_152, %c0_153] : memref<2x35x8x128xf32, #tpu.memory_space<vmem>>, vector<1x1x8x128xf32>
    %243 = vector.shape_cast %242 : vector<1x1x8x128xf32> to vector<8x128xf32>
    %c2_i32_154 = arith.constant 2 : i32
    %244 = tpu.dynamic_rotate %230 by %c2_i32_154 dim 0 : vector<8x128xf32>, i32 -> vector<8x128xf32>
    %245 = arith.mulf %243, %244 : vector<8x128xf32>
    %246 = arith.addf %241, %245 : vector<8x128xf32>
    %c0_155 = arith.constant 0 : index
    %c31 = arith.constant 31 : index
    %c0_156 = arith.constant 0 : index
    %c0_157 = arith.constant 0 : index
    %247 = vector.load %arg1[%c0_155, %c31, %c0_156, %c0_157] : memref<2x35x8x128xf32, #tpu.memory_space<vmem>>, vector<1x1x8x128xf32>
    %248 = vector.shape_cast %247 : vector<1x1x8x128xf32> to vector<8x128xf32>
    %c3_i32_158 = arith.constant 3 : i32
    %249 = tpu.dynamic_rotate %230 by %c3_i32_158 dim 0 : vector<8x128xf32>, i32 -> vector<8x128xf32>
    %250 = arith.mulf %248, %249 : vector<8x128xf32>
    %251 = arith.addf %246, %250 : vector<8x128xf32>
    %c0_159 = arith.constant 0 : index
    %c32 = arith.constant 32 : index
    %c0_160 = arith.constant 0 : index
    %c0_161 = arith.constant 0 : index
    %252 = vector.load %arg1[%c0_159, %c32, %c0_160, %c0_161] : memref<2x35x8x128xf32, #tpu.memory_space<vmem>>, vector<1x1x8x128xf32>
    %253 = vector.shape_cast %252 : vector<1x1x8x128xf32> to vector<8x128xf32>
    %c5_i32_162 = arith.constant 5 : i32
    %254 = tpu.dynamic_rotate %230 by %c5_i32_162 dim 0 : vector<8x128xf32>, i32 -> vector<8x128xf32>
    %255 = arith.mulf %253, %254 : vector<8x128xf32>
    %256 = arith.addf %251, %255 : vector<8x128xf32>
    %c0_163 = arith.constant 0 : index
    %c33 = arith.constant 33 : index
    %c0_164 = arith.constant 0 : index
    %c0_165 = arith.constant 0 : index
    %257 = vector.load %arg1[%c0_163, %c33, %c0_164, %c0_165] : memref<2x35x8x128xf32, #tpu.memory_space<vmem>>, vector<1x1x8x128xf32>
    %258 = vector.shape_cast %257 : vector<1x1x8x128xf32> to vector<8x128xf32>
    %c6_i32_166 = arith.constant 6 : i32
    %259 = tpu.dynamic_rotate %230 by %c6_i32_166 dim 0 : vector<8x128xf32>, i32 -> vector<8x128xf32>
    %260 = arith.mulf %258, %259 : vector<8x128xf32>
    %261 = arith.addf %256, %260 : vector<8x128xf32>
    %c0_167 = arith.constant 0 : index
    %c34 = arith.constant 34 : index
    %c0_168 = arith.constant 0 : index
    %c0_169 = arith.constant 0 : index
    %262 = vector.load %arg1[%c0_167, %c34, %c0_168, %c0_169] : memref<2x35x8x128xf32, #tpu.memory_space<vmem>>, vector<1x1x8x128xf32>
    %263 = vector.shape_cast %262 : vector<1x1x8x128xf32> to vector<8x128xf32>
    %c7_i32_170 = arith.constant 7 : i32
    %264 = tpu.dynamic_rotate %230 by %c7_i32_170 dim 0 : vector<8x128xf32>, i32 -> vector<8x128xf32>
    %265 = arith.mulf %263, %264 : vector<8x128xf32>
    %266 = arith.addf %261, %265 : vector<8x128xf32>
    %267 = arith.addf %0, %266 : vector<8x128xf32>
    %c1_171 = arith.constant 1 : index
    %c0_172 = arith.constant 0 : index
    %c0_173 = arith.constant 0 : index
    %c0_174 = arith.constant 0 : index
    %268 = vector.load %arg2[%c1_171, %c0_172, %c0_173, %c0_174] : memref<2x5x8x128xf32, #tpu.memory_space<vmem>>, vector<1x1x8x128xf32>
    %269 = vector.shape_cast %268 : vector<1x1x8x128xf32> to vector<8x128xf32>
    %c1_175 = arith.constant 1 : index
    %c0_176 = arith.constant 0 : index
    %c0_177 = arith.constant 0 : index
    %c0_178 = arith.constant 0 : index
    %270 = vector.load %arg1[%c1_175, %c0_176, %c0_177, %c0_178] : memref<2x35x8x128xf32, #tpu.memory_space<vmem>>, vector<1x1x8x128xf32>
    %271 = vector.shape_cast %270 : vector<1x1x8x128xf32> to vector<8x128xf32>
    %c2_i32_179 = arith.constant 2 : i32
    %272 = tpu.dynamic_rotate %267 by %c2_i32_179 dim 1 : vector<8x128xf32>, i32 -> vector<8x128xf32>
    %273 = arith.mulf %271, %272 : vector<8x128xf32>
    %274 = arith.addf %269, %273 : vector<8x128xf32>
    %c1_180 = arith.constant 1 : index
    %c1_181 = arith.constant 1 : index
    %c0_182 = arith.constant 0 : index
    %c0_183 = arith.constant 0 : index
    %275 = vector.load %arg1[%c1_180, %c1_181, %c0_182, %c0_183] : memref<2x35x8x128xf32, #tpu.memory_space<vmem>>, vector<1x1x8x128xf32>
    %276 = vector.shape_cast %275 : vector<1x1x8x128xf32> to vector<8x128xf32>
    %c1_i32_184 = arith.constant 1 : i32
    %277 = tpu.dynamic_rotate %267 by %c1_i32_184 dim 1 : vector<8x128xf32>, i32 -> vector<8x128xf32>
    %278 = arith.mulf %276, %277 : vector<8x128xf32>
    %279 = arith.addf %274, %278 : vector<8x128xf32>
    %c1_185 = arith.constant 1 : index
    %c2_186 = arith.constant 2 : index
    %c0_187 = arith.constant 0 : index
    %c0_188 = arith.constant 0 : index
    %280 = vector.load %arg1[%c1_185, %c2_186, %c0_187, %c0_188] : memref<2x35x8x128xf32, #tpu.memory_space<vmem>>, vector<1x1x8x128xf32>
    %281 = vector.shape_cast %280 : vector<1x1x8x128xf32> to vector<8x128xf32>
    %282 = arith.mulf %281, %267 : vector<8x128xf32>
    %283 = arith.addf %279, %282 : vector<8x128xf32>
    %c1_189 = arith.constant 1 : index
    %c3_190 = arith.constant 3 : index
    %c0_191 = arith.constant 0 : index
    %c0_192 = arith.constant 0 : index
    %284 = vector.load %arg1[%c1_189, %c3_190, %c0_191, %c0_192] : memref<2x35x8x128xf32, #tpu.memory_space<vmem>>, vector<1x1x8x128xf32>
    %285 = vector.shape_cast %284 : vector<1x1x8x128xf32> to vector<8x128xf32>
    %c127_i32_193 = arith.constant 127 : i32
    %286 = tpu.dynamic_rotate %267 by %c127_i32_193 dim 1 : vector<8x128xf32>, i32 -> vector<8x128xf32>
    %287 = arith.mulf %285, %286 : vector<8x128xf32>
    %288 = arith.addf %283, %287 : vector<8x128xf32>
    %c1_194 = arith.constant 1 : index
    %c4_195 = arith.constant 4 : index
    %c0_196 = arith.constant 0 : index
    %c0_197 = arith.constant 0 : index
    %289 = vector.load %arg1[%c1_194, %c4_195, %c0_196, %c0_197] : memref<2x35x8x128xf32, #tpu.memory_space<vmem>>, vector<1x1x8x128xf32>
    %290 = vector.shape_cast %289 : vector<1x1x8x128xf32> to vector<8x128xf32>
    %c126_i32_198 = arith.constant 126 : i32
    %291 = tpu.dynamic_rotate %267 by %c126_i32_198 dim 1 : vector<8x128xf32>, i32 -> vector<8x128xf32>
    %292 = arith.mulf %290, %291 : vector<8x128xf32>
    %293 = arith.addf %288, %292 : vector<8x128xf32>
    %c1_199 = arith.constant 1 : index
    %c1_200 = arith.constant 1 : index
    %c0_201 = arith.constant 0 : index
    %c0_202 = arith.constant 0 : index
    %294 = vector.load %arg2[%c1_199, %c1_200, %c0_201, %c0_202] : memref<2x5x8x128xf32, #tpu.memory_space<vmem>>, vector<1x1x8x128xf32>
    %295 = vector.shape_cast %294 : vector<1x1x8x128xf32> to vector<8x128xf32>
    %c1_203 = arith.constant 1 : index
    %c5_204 = arith.constant 5 : index
    %c0_205 = arith.constant 0 : index
    %c0_206 = arith.constant 0 : index
    %296 = vector.load %arg1[%c1_203, %c5_204, %c0_205, %c0_206] : memref<2x35x8x128xf32, #tpu.memory_space<vmem>>, vector<1x1x8x128xf32>
    %297 = vector.shape_cast %296 : vector<1x1x8x128xf32> to vector<8x128xf32>
    %298 = arith.mulf %297, %293 : vector<8x128xf32>
    %299 = arith.addf %295, %298 : vector<8x128xf32>
    %c1_207 = arith.constant 1 : index
    %c6_208 = arith.constant 6 : index
    %c0_209 = arith.constant 0 : index
    %c0_210 = arith.constant 0 : index
    %300 = vector.load %arg1[%c1_207, %c6_208, %c0_209, %c0_210] : memref<2x35x8x128xf32, #tpu.memory_space<vmem>>, vector<1x1x8x128xf32>
    %301 = vector.shape_cast %300 : vector<1x1x8x128xf32> to vector<8x128xf32>
    %c16_i32_211 = arith.constant 16 : i32
    %302 = tpu.dynamic_rotate %293 by %c16_i32_211 dim 1 : vector<8x128xf32>, i32 -> vector<8x128xf32>
    %303 = arith.mulf %301, %302 : vector<8x128xf32>
    %304 = arith.addf %299, %303 : vector<8x128xf32>
    %c1_212 = arith.constant 1 : index
    %c7_213 = arith.constant 7 : index
    %c0_214 = arith.constant 0 : index
    %c0_215 = arith.constant 0 : index
    %305 = vector.load %arg1[%c1_212, %c7_213, %c0_214, %c0_215] : memref<2x35x8x128xf32, #tpu.memory_space<vmem>>, vector<1x1x8x128xf32>
    %306 = vector.shape_cast %305 : vector<1x1x8x128xf32> to vector<8x128xf32>
    %c32_i32_216 = arith.constant 32 : i32
    %307 = tpu.dynamic_rotate %293 by %c32_i32_216 dim 1 : vector<8x128xf32>, i32 -> vector<8x128xf32>
    %308 = arith.mulf %306, %307 : vector<8x128xf32>
    %309 = arith.addf %304, %308 : vector<8x128xf32>
    %c1_217 = arith.constant 1 : index
    %c8_218 = arith.constant 8 : index
    %c0_219 = arith.constant 0 : index
    %c0_220 = arith.constant 0 : index
    %310 = vector.load %arg1[%c1_217, %c8_218, %c0_219, %c0_220] : memref<2x35x8x128xf32, #tpu.memory_space<vmem>>, vector<1x1x8x128xf32>
    %311 = vector.shape_cast %310 : vector<1x1x8x128xf32> to vector<8x128xf32>
    %c48_i32_221 = arith.constant 48 : i32
    %312 = tpu.dynamic_rotate %293 by %c48_i32_221 dim 1 : vector<8x128xf32>, i32 -> vector<8x128xf32>
    %313 = arith.mulf %311, %312 : vector<8x128xf32>
    %314 = arith.addf %309, %313 : vector<8x128xf32>
    %c1_222 = arith.constant 1 : index
    %c9_223 = arith.constant 9 : index
    %c0_224 = arith.constant 0 : index
    %c0_225 = arith.constant 0 : index
    %315 = vector.load %arg1[%c1_222, %c9_223, %c0_224, %c0_225] : memref<2x35x8x128xf32, #tpu.memory_space<vmem>>, vector<1x1x8x128xf32>
    %316 = vector.shape_cast %315 : vector<1x1x8x128xf32> to vector<8x128xf32>
    %c64_i32_226 = arith.constant 64 : i32
    %317 = tpu.dynamic_rotate %293 by %c64_i32_226 dim 1 : vector<8x128xf32>, i32 -> vector<8x128xf32>
    %318 = arith.mulf %316, %317 : vector<8x128xf32>
    %319 = arith.addf %314, %318 : vector<8x128xf32>
    %c1_227 = arith.constant 1 : index
    %c10_228 = arith.constant 10 : index
    %c0_229 = arith.constant 0 : index
    %c0_230 = arith.constant 0 : index
    %320 = vector.load %arg1[%c1_227, %c10_228, %c0_229, %c0_230] : memref<2x35x8x128xf32, #tpu.memory_space<vmem>>, vector<1x1x8x128xf32>
    %321 = vector.shape_cast %320 : vector<1x1x8x128xf32> to vector<8x128xf32>
    %c80_i32_231 = arith.constant 80 : i32
    %322 = tpu.dynamic_rotate %293 by %c80_i32_231 dim 1 : vector<8x128xf32>, i32 -> vector<8x128xf32>
    %323 = arith.mulf %321, %322 : vector<8x128xf32>
    %324 = arith.addf %319, %323 : vector<8x128xf32>
    %c1_232 = arith.constant 1 : index
    %c11_233 = arith.constant 11 : index
    %c0_234 = arith.constant 0 : index
    %c0_235 = arith.constant 0 : index
    %325 = vector.load %arg1[%c1_232, %c11_233, %c0_234, %c0_235] : memref<2x35x8x128xf32, #tpu.memory_space<vmem>>, vector<1x1x8x128xf32>
    %326 = vector.shape_cast %325 : vector<1x1x8x128xf32> to vector<8x128xf32>
    %c96_i32_236 = arith.constant 96 : i32
    %327 = tpu.dynamic_rotate %293 by %c96_i32_236 dim 1 : vector<8x128xf32>, i32 -> vector<8x128xf32>
    %328 = arith.mulf %326, %327 : vector<8x128xf32>
    %329 = arith.addf %324, %328 : vector<8x128xf32>
    %c1_237 = arith.constant 1 : index
    %c12_238 = arith.constant 12 : index
    %c0_239 = arith.constant 0 : index
    %c0_240 = arith.constant 0 : index
    %330 = vector.load %arg1[%c1_237, %c12_238, %c0_239, %c0_240] : memref<2x35x8x128xf32, #tpu.memory_space<vmem>>, vector<1x1x8x128xf32>
    %331 = vector.shape_cast %330 : vector<1x1x8x128xf32> to vector<8x128xf32>
    %c112_i32_241 = arith.constant 112 : i32
    %332 = tpu.dynamic_rotate %293 by %c112_i32_241 dim 1 : vector<8x128xf32>, i32 -> vector<8x128xf32>
    %333 = arith.mulf %331, %332 : vector<8x128xf32>
    %334 = arith.addf %329, %333 : vector<8x128xf32>
    %cst_242 = arith.constant 5.000000e-01 : f32
    %335 = vector.broadcast %cst_242 : f32 to vector<8x128xf32>
    %336 = arith.mulf %335, %334 : vector<8x128xf32>
    %cst_243 = arith.constant 0.707106769 : f32
    %337 = vector.broadcast %cst_243 : f32 to vector<8x128xf32>
    %338 = arith.mulf %334, %337 : vector<8x128xf32>
    %339 = math.absf %338 : vector<8x128xf32>
    %cst_244 = arith.constant 0.327591091 : f32
    %340 = vector.broadcast %cst_244 : f32 to vector<8x128xf32>
    %341 = arith.mulf %340, %339 : vector<8x128xf32>
    %cst_245 = arith.constant 1.000000e+00 : f32
    %342 = vector.broadcast %cst_245 : f32 to vector<8x128xf32>
    %343 = arith.addf %342, %341 : vector<8x128xf32>
    %344 = tpu.reciprocal %343 {approx = true} : vector<8x128xf32> -> vector<8x128xf32>
    %345 = arith.mulf %343, %344 : vector<8x128xf32>
    %cst_246 = arith.constant 2.000000e+00 : f32
    %346 = vector.broadcast %cst_246 : f32 to vector<8x128xf32>
    %347 = arith.subf %346, %345 : vector<8x128xf32>
    %348 = arith.mulf %344, %347 : vector<8x128xf32>
    %cst_247 = arith.constant 1.06140542 : f32
    %349 = vector.broadcast %cst_247 : f32 to vector<8x128xf32>
    %350 = arith.mulf %349, %348 : vector<8x128xf32>
    %cst_248 = arith.constant -1.45315206 : f32
    %351 = vector.broadcast %cst_248 : f32 to vector<8x128xf32>
    %352 = arith.addf %350, %351 : vector<8x128xf32>
    %353 = arith.mulf %352, %348 : vector<8x128xf32>
    %cst_249 = arith.constant 1.42141378 : f32
    %354 = vector.broadcast %cst_249 : f32 to vector<8x128xf32>
    %355 = arith.addf %353, %354 : vector<8x128xf32>
    %356 = arith.mulf %355, %348 : vector<8x128xf32>
    %cst_250 = arith.constant -0.284496725 : f32
    %357 = vector.broadcast %cst_250 : f32 to vector<8x128xf32>
    %358 = arith.addf %356, %357 : vector<8x128xf32>
    %359 = arith.mulf %358, %348 : vector<8x128xf32>
    %cst_251 = arith.constant 0.254829586 : f32
    %360 = vector.broadcast %cst_251 : f32 to vector<8x128xf32>
    %361 = arith.addf %359, %360 : vector<8x128xf32>
    %362 = arith.mulf %361, %348 : vector<8x128xf32>
    %cst_252 = arith.constant 0.000000e+00 : f32
    %363 = vector.broadcast %cst_252 : f32 to vector<8x128xf32>
    %364 = arith.subf %363, %339 : vector<8x128xf32>
    %365 = arith.mulf %364, %339 : vector<8x128xf32>
    %366 = math.exp %365 : vector<8x128xf32>
    %367 = arith.mulf %362, %366 : vector<8x128xf32>
    %cst_253 = arith.constant 1.000000e+00 : f32
    %368 = vector.broadcast %cst_253 : f32 to vector<8x128xf32>
    %369 = arith.subf %368, %367 : vector<8x128xf32>
    %cst_254 = arith.constant 0.000000e+00 : f32
    %370 = vector.broadcast %cst_254 : f32 to vector<8x128xf32>
    %371 = arith.cmpf oge, %338, %370 : vector<8x128xf32>
    %cst_255 = arith.constant 0.000000e+00 : f32
    %372 = vector.broadcast %cst_255 : f32 to vector<8x128xf32>
    %373 = arith.subf %372, %369 : vector<8x128xf32>
    %374 = arith.select %371, %369, %373 : vector<8x128xi1>, vector<8x128xf32>
    %cst_256 = arith.constant 1.000000e+00 : f32
    %375 = vector.broadcast %cst_256 : f32 to vector<8x128xf32>
    %376 = arith.addf %375, %374 : vector<8x128xf32>
    %377 = arith.mulf %336, %376 : vector<8x128xf32>
    %c1_257 = arith.constant 1 : index
    %c2_258 = arith.constant 2 : index
    %c0_259 = arith.constant 0 : index
    %c0_260 = arith.constant 0 : index
    %378 = vector.load %arg2[%c1_257, %c2_258, %c0_259, %c0_260] : memref<2x5x8x128xf32, #tpu.memory_space<vmem>>, vector<1x1x8x128xf32>
    %379 = vector.shape_cast %378 : vector<1x1x8x128xf32> to vector<8x128xf32>
    %c1_261 = arith.constant 1 : index
    %c13_262 = arith.constant 13 : index
    %c0_263 = arith.constant 0 : index
    %c0_264 = arith.constant 0 : index
    %380 = vector.load %arg1[%c1_261, %c13_262, %c0_263, %c0_264] : memref<2x35x8x128xf32, #tpu.memory_space<vmem>>, vector<1x1x8x128xf32>
    %381 = vector.shape_cast %380 : vector<1x1x8x128xf32> to vector<8x128xf32>
    %382 = arith.mulf %381, %377 : vector<8x128xf32>
    %383 = arith.addf %379, %382 : vector<8x128xf32>
    %c1_265 = arith.constant 1 : index
    %c14_266 = arith.constant 14 : index
    %c0_267 = arith.constant 0 : index
    %c0_268 = arith.constant 0 : index
    %384 = vector.load %arg1[%c1_265, %c14_266, %c0_267, %c0_268] : memref<2x35x8x128xf32, #tpu.memory_space<vmem>>, vector<1x1x8x128xf32>
    %385 = vector.shape_cast %384 : vector<1x1x8x128xf32> to vector<8x128xf32>
    %c16_i32_269 = arith.constant 16 : i32
    %386 = tpu.dynamic_rotate %377 by %c16_i32_269 dim 1 : vector<8x128xf32>, i32 -> vector<8x128xf32>
    %387 = arith.mulf %385, %386 : vector<8x128xf32>
    %388 = arith.addf %383, %387 : vector<8x128xf32>
    %c1_270 = arith.constant 1 : index
    %c15_271 = arith.constant 15 : index
    %c0_272 = arith.constant 0 : index
    %c0_273 = arith.constant 0 : index
    %389 = vector.load %arg1[%c1_270, %c15_271, %c0_272, %c0_273] : memref<2x35x8x128xf32, #tpu.memory_space<vmem>>, vector<1x1x8x128xf32>
    %390 = vector.shape_cast %389 : vector<1x1x8x128xf32> to vector<8x128xf32>
    %c32_i32_274 = arith.constant 32 : i32
    %391 = tpu.dynamic_rotate %377 by %c32_i32_274 dim 1 : vector<8x128xf32>, i32 -> vector<8x128xf32>
    %392 = arith.mulf %390, %391 : vector<8x128xf32>
    %393 = arith.addf %388, %392 : vector<8x128xf32>
    %c1_275 = arith.constant 1 : index
    %c16_276 = arith.constant 16 : index
    %c0_277 = arith.constant 0 : index
    %c0_278 = arith.constant 0 : index
    %394 = vector.load %arg1[%c1_275, %c16_276, %c0_277, %c0_278] : memref<2x35x8x128xf32, #tpu.memory_space<vmem>>, vector<1x1x8x128xf32>
    %395 = vector.shape_cast %394 : vector<1x1x8x128xf32> to vector<8x128xf32>
    %c48_i32_279 = arith.constant 48 : i32
    %396 = tpu.dynamic_rotate %377 by %c48_i32_279 dim 1 : vector<8x128xf32>, i32 -> vector<8x128xf32>
    %397 = arith.mulf %395, %396 : vector<8x128xf32>
    %398 = arith.addf %393, %397 : vector<8x128xf32>
    %c1_280 = arith.constant 1 : index
    %c17_281 = arith.constant 17 : index
    %c0_282 = arith.constant 0 : index
    %c0_283 = arith.constant 0 : index
    %399 = vector.load %arg1[%c1_280, %c17_281, %c0_282, %c0_283] : memref<2x35x8x128xf32, #tpu.memory_space<vmem>>, vector<1x1x8x128xf32>
    %400 = vector.shape_cast %399 : vector<1x1x8x128xf32> to vector<8x128xf32>
    %c64_i32_284 = arith.constant 64 : i32
    %401 = tpu.dynamic_rotate %377 by %c64_i32_284 dim 1 : vector<8x128xf32>, i32 -> vector<8x128xf32>
    %402 = arith.mulf %400, %401 : vector<8x128xf32>
    %403 = arith.addf %398, %402 : vector<8x128xf32>
    %c1_285 = arith.constant 1 : index
    %c18_286 = arith.constant 18 : index
    %c0_287 = arith.constant 0 : index
    %c0_288 = arith.constant 0 : index
    %404 = vector.load %arg1[%c1_285, %c18_286, %c0_287, %c0_288] : memref<2x35x8x128xf32, #tpu.memory_space<vmem>>, vector<1x1x8x128xf32>
    %405 = vector.shape_cast %404 : vector<1x1x8x128xf32> to vector<8x128xf32>
    %c80_i32_289 = arith.constant 80 : i32
    %406 = tpu.dynamic_rotate %377 by %c80_i32_289 dim 1 : vector<8x128xf32>, i32 -> vector<8x128xf32>
    %407 = arith.mulf %405, %406 : vector<8x128xf32>
    %408 = arith.addf %403, %407 : vector<8x128xf32>
    %c1_290 = arith.constant 1 : index
    %c19_291 = arith.constant 19 : index
    %c0_292 = arith.constant 0 : index
    %c0_293 = arith.constant 0 : index
    %409 = vector.load %arg1[%c1_290, %c19_291, %c0_292, %c0_293] : memref<2x35x8x128xf32, #tpu.memory_space<vmem>>, vector<1x1x8x128xf32>
    %410 = vector.shape_cast %409 : vector<1x1x8x128xf32> to vector<8x128xf32>
    %c96_i32_294 = arith.constant 96 : i32
    %411 = tpu.dynamic_rotate %377 by %c96_i32_294 dim 1 : vector<8x128xf32>, i32 -> vector<8x128xf32>
    %412 = arith.mulf %410, %411 : vector<8x128xf32>
    %413 = arith.addf %408, %412 : vector<8x128xf32>
    %c1_295 = arith.constant 1 : index
    %c20_296 = arith.constant 20 : index
    %c0_297 = arith.constant 0 : index
    %c0_298 = arith.constant 0 : index
    %414 = vector.load %arg1[%c1_295, %c20_296, %c0_297, %c0_298] : memref<2x35x8x128xf32, #tpu.memory_space<vmem>>, vector<1x1x8x128xf32>
    %415 = vector.shape_cast %414 : vector<1x1x8x128xf32> to vector<8x128xf32>
    %c112_i32_299 = arith.constant 112 : i32
    %416 = tpu.dynamic_rotate %377 by %c112_i32_299 dim 1 : vector<8x128xf32>, i32 -> vector<8x128xf32>
    %417 = arith.mulf %415, %416 : vector<8x128xf32>
    %418 = arith.addf %413, %417 : vector<8x128xf32>
    %c1_300 = arith.constant 1 : index
    %c3_301 = arith.constant 3 : index
    %c0_302 = arith.constant 0 : index
    %c0_303 = arith.constant 0 : index
    %419 = vector.load %arg2[%c1_300, %c3_301, %c0_302, %c0_303] : memref<2x5x8x128xf32, #tpu.memory_space<vmem>>, vector<1x1x8x128xf32>
    %420 = vector.shape_cast %419 : vector<1x1x8x128xf32> to vector<8x128xf32>
    %c1_304 = arith.constant 1 : index
    %c21_305 = arith.constant 21 : index
    %c0_306 = arith.constant 0 : index
    %c0_307 = arith.constant 0 : index
    %421 = vector.load %arg1[%c1_304, %c21_305, %c0_306, %c0_307] : memref<2x35x8x128xf32, #tpu.memory_space<vmem>>, vector<1x1x8x128xf32>
    %422 = vector.shape_cast %421 : vector<1x1x8x128xf32> to vector<8x128xf32>
    %423 = arith.mulf %422, %418 : vector<8x128xf32>
    %424 = arith.addf %420, %423 : vector<8x128xf32>
    %c1_308 = arith.constant 1 : index
    %c22_309 = arith.constant 22 : index
    %c0_310 = arith.constant 0 : index
    %c0_311 = arith.constant 0 : index
    %425 = vector.load %arg1[%c1_308, %c22_309, %c0_310, %c0_311] : memref<2x35x8x128xf32, #tpu.memory_space<vmem>>, vector<1x1x8x128xf32>
    %426 = vector.shape_cast %425 : vector<1x1x8x128xf32> to vector<8x128xf32>
    %c1_i32_312 = arith.constant 1 : i32
    %427 = tpu.dynamic_rotate %418 by %c1_i32_312 dim 0 : vector<8x128xf32>, i32 -> vector<8x128xf32>
    %428 = arith.mulf %426, %427 : vector<8x128xf32>
    %429 = arith.addf %424, %428 : vector<8x128xf32>
    %c1_313 = arith.constant 1 : index
    %c23_314 = arith.constant 23 : index
    %c0_315 = arith.constant 0 : index
    %c0_316 = arith.constant 0 : index
    %430 = vector.load %arg1[%c1_313, %c23_314, %c0_315, %c0_316] : memref<2x35x8x128xf32, #tpu.memory_space<vmem>>, vector<1x1x8x128xf32>
    %431 = vector.shape_cast %430 : vector<1x1x8x128xf32> to vector<8x128xf32>
    %c2_i32_317 = arith.constant 2 : i32
    %432 = tpu.dynamic_rotate %418 by %c2_i32_317 dim 0 : vector<8x128xf32>, i32 -> vector<8x128xf32>
    %433 = arith.mulf %431, %432 : vector<8x128xf32>
    %434 = arith.addf %429, %433 : vector<8x128xf32>
    %c1_318 = arith.constant 1 : index
    %c24_319 = arith.constant 24 : index
    %c0_320 = arith.constant 0 : index
    %c0_321 = arith.constant 0 : index
    %435 = vector.load %arg1[%c1_318, %c24_319, %c0_320, %c0_321] : memref<2x35x8x128xf32, #tpu.memory_space<vmem>>, vector<1x1x8x128xf32>
    %436 = vector.shape_cast %435 : vector<1x1x8x128xf32> to vector<8x128xf32>
    %c3_i32_322 = arith.constant 3 : i32
    %437 = tpu.dynamic_rotate %418 by %c3_i32_322 dim 0 : vector<8x128xf32>, i32 -> vector<8x128xf32>
    %438 = arith.mulf %436, %437 : vector<8x128xf32>
    %439 = arith.addf %434, %438 : vector<8x128xf32>
    %c1_323 = arith.constant 1 : index
    %c25_324 = arith.constant 25 : index
    %c0_325 = arith.constant 0 : index
    %c0_326 = arith.constant 0 : index
    %440 = vector.load %arg1[%c1_323, %c25_324, %c0_325, %c0_326] : memref<2x35x8x128xf32, #tpu.memory_space<vmem>>, vector<1x1x8x128xf32>
    %441 = vector.shape_cast %440 : vector<1x1x8x128xf32> to vector<8x128xf32>
    %c5_i32_327 = arith.constant 5 : i32
    %442 = tpu.dynamic_rotate %418 by %c5_i32_327 dim 0 : vector<8x128xf32>, i32 -> vector<8x128xf32>
    %443 = arith.mulf %441, %442 : vector<8x128xf32>
    %444 = arith.addf %439, %443 : vector<8x128xf32>
    %c1_328 = arith.constant 1 : index
    %c26_329 = arith.constant 26 : index
    %c0_330 = arith.constant 0 : index
    %c0_331 = arith.constant 0 : index
    %445 = vector.load %arg1[%c1_328, %c26_329, %c0_330, %c0_331] : memref<2x35x8x128xf32, #tpu.memory_space<vmem>>, vector<1x1x8x128xf32>
    %446 = vector.shape_cast %445 : vector<1x1x8x128xf32> to vector<8x128xf32>
    %c6_i32_332 = arith.constant 6 : i32
    %447 = tpu.dynamic_rotate %418 by %c6_i32_332 dim 0 : vector<8x128xf32>, i32 -> vector<8x128xf32>
    %448 = arith.mulf %446, %447 : vector<8x128xf32>
    %449 = arith.addf %444, %448 : vector<8x128xf32>
    %c1_333 = arith.constant 1 : index
    %c27_334 = arith.constant 27 : index
    %c0_335 = arith.constant 0 : index
    %c0_336 = arith.constant 0 : index
    %450 = vector.load %arg1[%c1_333, %c27_334, %c0_335, %c0_336] : memref<2x35x8x128xf32, #tpu.memory_space<vmem>>, vector<1x1x8x128xf32>
    %451 = vector.shape_cast %450 : vector<1x1x8x128xf32> to vector<8x128xf32>
    %c7_i32_337 = arith.constant 7 : i32
    %452 = tpu.dynamic_rotate %418 by %c7_i32_337 dim 0 : vector<8x128xf32>, i32 -> vector<8x128xf32>
    %453 = arith.mulf %451, %452 : vector<8x128xf32>
    %454 = arith.addf %449, %453 : vector<8x128xf32>
    %cst_338 = arith.constant 5.000000e-01 : f32
    %455 = vector.broadcast %cst_338 : f32 to vector<8x128xf32>
    %456 = arith.mulf %455, %454 : vector<8x128xf32>
    %cst_339 = arith.constant 0.707106769 : f32
    %457 = vector.broadcast %cst_339 : f32 to vector<8x128xf32>
    %458 = arith.mulf %454, %457 : vector<8x128xf32>
    %459 = math.absf %458 : vector<8x128xf32>
    %cst_340 = arith.constant 0.327591091 : f32
    %460 = vector.broadcast %cst_340 : f32 to vector<8x128xf32>
    %461 = arith.mulf %460, %459 : vector<8x128xf32>
    %cst_341 = arith.constant 1.000000e+00 : f32
    %462 = vector.broadcast %cst_341 : f32 to vector<8x128xf32>
    %463 = arith.addf %462, %461 : vector<8x128xf32>
    %464 = tpu.reciprocal %463 {approx = true} : vector<8x128xf32> -> vector<8x128xf32>
    %465 = arith.mulf %463, %464 : vector<8x128xf32>
    %cst_342 = arith.constant 2.000000e+00 : f32
    %466 = vector.broadcast %cst_342 : f32 to vector<8x128xf32>
    %467 = arith.subf %466, %465 : vector<8x128xf32>
    %468 = arith.mulf %464, %467 : vector<8x128xf32>
    %cst_343 = arith.constant 1.06140542 : f32
    %469 = vector.broadcast %cst_343 : f32 to vector<8x128xf32>
    %470 = arith.mulf %469, %468 : vector<8x128xf32>
    %cst_344 = arith.constant -1.45315206 : f32
    %471 = vector.broadcast %cst_344 : f32 to vector<8x128xf32>
    %472 = arith.addf %470, %471 : vector<8x128xf32>
    %473 = arith.mulf %472, %468 : vector<8x128xf32>
    %cst_345 = arith.constant 1.42141378 : f32
    %474 = vector.broadcast %cst_345 : f32 to vector<8x128xf32>
    %475 = arith.addf %473, %474 : vector<8x128xf32>
    %476 = arith.mulf %475, %468 : vector<8x128xf32>
    %cst_346 = arith.constant -0.284496725 : f32
    %477 = vector.broadcast %cst_346 : f32 to vector<8x128xf32>
    %478 = arith.addf %476, %477 : vector<8x128xf32>
    %479 = arith.mulf %478, %468 : vector<8x128xf32>
    %cst_347 = arith.constant 0.254829586 : f32
    %480 = vector.broadcast %cst_347 : f32 to vector<8x128xf32>
    %481 = arith.addf %479, %480 : vector<8x128xf32>
    %482 = arith.mulf %481, %468 : vector<8x128xf32>
    %cst_348 = arith.constant 0.000000e+00 : f32
    %483 = vector.broadcast %cst_348 : f32 to vector<8x128xf32>
    %484 = arith.subf %483, %459 : vector<8x128xf32>
    %485 = arith.mulf %484, %459 : vector<8x128xf32>
    %486 = math.exp %485 : vector<8x128xf32>
    %487 = arith.mulf %482, %486 : vector<8x128xf32>
    %cst_349 = arith.constant 1.000000e+00 : f32
    %488 = vector.broadcast %cst_349 : f32 to vector<8x128xf32>
    %489 = arith.subf %488, %487 : vector<8x128xf32>
    %cst_350 = arith.constant 0.000000e+00 : f32
    %490 = vector.broadcast %cst_350 : f32 to vector<8x128xf32>
    %491 = arith.cmpf oge, %458, %490 : vector<8x128xf32>
    %cst_351 = arith.constant 0.000000e+00 : f32
    %492 = vector.broadcast %cst_351 : f32 to vector<8x128xf32>
    %493 = arith.subf %492, %489 : vector<8x128xf32>
    %494 = arith.select %491, %489, %493 : vector<8x128xi1>, vector<8x128xf32>
    %cst_352 = arith.constant 1.000000e+00 : f32
    %495 = vector.broadcast %cst_352 : f32 to vector<8x128xf32>
    %496 = arith.addf %495, %494 : vector<8x128xf32>
    %497 = arith.mulf %456, %496 : vector<8x128xf32>
    %c1_353 = arith.constant 1 : index
    %c4_354 = arith.constant 4 : index
    %c0_355 = arith.constant 0 : index
    %c0_356 = arith.constant 0 : index
    %498 = vector.load %arg2[%c1_353, %c4_354, %c0_355, %c0_356] : memref<2x5x8x128xf32, #tpu.memory_space<vmem>>, vector<1x1x8x128xf32>
    %499 = vector.shape_cast %498 : vector<1x1x8x128xf32> to vector<8x128xf32>
    %c1_357 = arith.constant 1 : index
    %c28_358 = arith.constant 28 : index
    %c0_359 = arith.constant 0 : index
    %c0_360 = arith.constant 0 : index
    %500 = vector.load %arg1[%c1_357, %c28_358, %c0_359, %c0_360] : memref<2x35x8x128xf32, #tpu.memory_space<vmem>>, vector<1x1x8x128xf32>
    %501 = vector.shape_cast %500 : vector<1x1x8x128xf32> to vector<8x128xf32>
    %502 = arith.mulf %501, %497 : vector<8x128xf32>
    %503 = arith.addf %499, %502 : vector<8x128xf32>
    %c1_361 = arith.constant 1 : index
    %c29_362 = arith.constant 29 : index
    %c0_363 = arith.constant 0 : index
    %c0_364 = arith.constant 0 : index
    %504 = vector.load %arg1[%c1_361, %c29_362, %c0_363, %c0_364] : memref<2x35x8x128xf32, #tpu.memory_space<vmem>>, vector<1x1x8x128xf32>
    %505 = vector.shape_cast %504 : vector<1x1x8x128xf32> to vector<8x128xf32>
    %c1_i32_365 = arith.constant 1 : i32
    %506 = tpu.dynamic_rotate %497 by %c1_i32_365 dim 0 : vector<8x128xf32>, i32 -> vector<8x128xf32>
    %507 = arith.mulf %505, %506 : vector<8x128xf32>
    %508 = arith.addf %503, %507 : vector<8x128xf32>
    %c1_366 = arith.constant 1 : index
    %c30_367 = arith.constant 30 : index
    %c0_368 = arith.constant 0 : index
    %c0_369 = arith.constant 0 : index
    %509 = vector.load %arg1[%c1_366, %c30_367, %c0_368, %c0_369] : memref<2x35x8x128xf32, #tpu.memory_space<vmem>>, vector<1x1x8x128xf32>
    %510 = vector.shape_cast %509 : vector<1x1x8x128xf32> to vector<8x128xf32>
    %c2_i32_370 = arith.constant 2 : i32
    %511 = tpu.dynamic_rotate %497 by %c2_i32_370 dim 0 : vector<8x128xf32>, i32 -> vector<8x128xf32>
    %512 = arith.mulf %510, %511 : vector<8x128xf32>
    %513 = arith.addf %508, %512 : vector<8x128xf32>
    %c1_371 = arith.constant 1 : index
    %c31_372 = arith.constant 31 : index
    %c0_373 = arith.constant 0 : index
    %c0_374 = arith.constant 0 : index
    %514 = vector.load %arg1[%c1_371, %c31_372, %c0_373, %c0_374] : memref<2x35x8x128xf32, #tpu.memory_space<vmem>>, vector<1x1x8x128xf32>
    %515 = vector.shape_cast %514 : vector<1x1x8x128xf32> to vector<8x128xf32>
    %c3_i32_375 = arith.constant 3 : i32
    %516 = tpu.dynamic_rotate %497 by %c3_i32_375 dim 0 : vector<8x128xf32>, i32 -> vector<8x128xf32>
    %517 = arith.mulf %515, %516 : vector<8x128xf32>
    %518 = arith.addf %513, %517 : vector<8x128xf32>
    %c1_376 = arith.constant 1 : index
    %c32_377 = arith.constant 32 : index
    %c0_378 = arith.constant 0 : index
    %c0_379 = arith.constant 0 : index
    %519 = vector.load %arg1[%c1_376, %c32_377, %c0_378, %c0_379] : memref<2x35x8x128xf32, #tpu.memory_space<vmem>>, vector<1x1x8x128xf32>
    %520 = vector.shape_cast %519 : vector<1x1x8x128xf32> to vector<8x128xf32>
    %c5_i32_380 = arith.constant 5 : i32
    %521 = tpu.dynamic_rotate %497 by %c5_i32_380 dim 0 : vector<8x128xf32>, i32 -> vector<8x128xf32>
    %522 = arith.mulf %520, %521 : vector<8x128xf32>
    %523 = arith.addf %518, %522 : vector<8x128xf32>
    %c1_381 = arith.constant 1 : index
    %c33_382 = arith.constant 33 : index
    %c0_383 = arith.constant 0 : index
    %c0_384 = arith.constant 0 : index
    %524 = vector.load %arg1[%c1_381, %c33_382, %c0_383, %c0_384] : memref<2x35x8x128xf32, #tpu.memory_space<vmem>>, vector<1x1x8x128xf32>
    %525 = vector.shape_cast %524 : vector<1x1x8x128xf32> to vector<8x128xf32>
    %c6_i32_385 = arith.constant 6 : i32
    %526 = tpu.dynamic_rotate %497 by %c6_i32_385 dim 0 : vector<8x128xf32>, i32 -> vector<8x128xf32>
    %527 = arith.mulf %525, %526 : vector<8x128xf32>
    %528 = arith.addf %523, %527 : vector<8x128xf32>
    %c1_386 = arith.constant 1 : index
    %c34_387 = arith.constant 34 : index
    %c0_388 = arith.constant 0 : index
    %c0_389 = arith.constant 0 : index
    %529 = vector.load %arg1[%c1_386, %c34_387, %c0_388, %c0_389] : memref<2x35x8x128xf32, #tpu.memory_space<vmem>>, vector<1x1x8x128xf32>
    %530 = vector.shape_cast %529 : vector<1x1x8x128xf32> to vector<8x128xf32>
    %c7_i32_390 = arith.constant 7 : i32
    %531 = tpu.dynamic_rotate %497 by %c7_i32_390 dim 0 : vector<8x128xf32>, i32 -> vector<8x128xf32>
    %532 = arith.mulf %530, %531 : vector<8x128xf32>
    %533 = arith.addf %528, %532 : vector<8x128xf32>
    %534 = arith.addf %267, %533 : vector<8x128xf32>
    %c0_391 = arith.constant 0 : index
    %c0_392 = arith.constant 0 : index
    %535 = vector.load %arg3[%c0_391, %c0_392] : memref<8x128xf32, #tpu.memory_space<vmem>>, vector<8x128xf32>
    tpu.vector_store %arg3[%c0_391, %c0_392], %534 {strides = array<i32>} : memref<8x128xf32, #tpu.memory_space<vmem>>, vector<8x128xf32>,
    return
  }
}

</mosaic_0001>

<bundles_post_ra>
// kernel: stage_forward.1
= control target key start
LH: loop header
LB: loop body
LE: loop exit
PB: predicated region body
PF: predicated region fallthrough
CT: control target
= control target key end

     0   :  { %8 = vsyncpa [#allocation3], 0  ;;  %s748_s0 = inlined_call_operand.vmem [shape: f32[8,128], index: 0, kind: input, shape index: {}]   ;;  %s749_s1 = inlined_call_operand.hbm [shape: f32[2,35,8,128], index: 1, kind: input, shape index: {}]   ;;  %s750_s2 = inlined_call_operand.hbm [shape: f32[2,5,8,128], index: 2, kind: input, shape index: {}]   ;;  %s751_s3 = inlined_call_operand.vmem [shape: f32[8,128], index: 3, kind: output, shape index: {}]  }
   0x1   :  { %s16_s14 = sshll.u32 %s749_s1, 4  ;;  %s17_s14 = int_to_ptr.hbm [resolvable:$true] %s16_s14 }
   0x2   :  { %9 = vsyncpa [#allocation5], 0  ;;  %s649_s15 = smov [#allocation2]   ;;  %s29_s19 = sshll.u32 %s750_s2, 4  ;;  %s30_s19 = int_to_ptr.hbm [resolvable:$true] %s29_s19 }
   0x3   :  { %s18_s16 = sshll.u32 %s649_s15, 4  ;;  %s650_s20 = smov 128   ;;  %s19_s16 = int_to_ptr.vmem [resolvable:$true] %s18_s16 }
   0x4   :  { %s651_s21 = smov 8   ;;  %s652_s22 = smov [#allocation4]  }
   0x5   :  { %24 = dma.hbm_to_vmem [thread:$0]  %s17_s14, 8960, %s19_s16, [#allocation3], %s650_s20, %s650_s20, %s651_s21  }
   0x6   :  { %s31_s23 = sshll.u32 %s652_s22, 4  ;;  %s32_s23 = int_to_ptr.vmem [resolvable:$true] %s31_s23 }
   0x7   :  { %37 = dma.hbm_to_vmem [thread:$0]  %s30_s19, 1280, %s32_s23, [#allocation5], %s650_s20, %s650_s20, %s651_s21  }
   0x8   :  { %645 = dma.done.wait [#allocation3], 8960  }
   0x9   :  { %646 = vsyncadd [#allocation3], 4294958336 }
   0xa   :  { %647 = dma.done.wait [#allocation5], 1280  }
   0xb   :  { %648 = vsyncadd [#allocation5], 4294966016  ;;  %v693_v0 = vld [vmem:[%s748_s0] sm:$0xff]  ;;  %s653_s25 = smov 2   ;;  %s654_s2 = smov 127   ;;  %v47_v5 = vld [vmem:[#allocation4] sm:$0xff] }
   0xc   :  { %49 = vrot.lane.b32.xlu0 %v693_v0, %s653_s25  ;;  %65 = vrot.lane.b32.xlu1 %v693_v0, %s654_s2  ;;  %s655_s26 = smov 1   ;;  %s656_s27 = smov 126   ;;  %v48_v3 = vld [vmem:[#allocation2] sm:$0xff]  ;;  %v54_v6 = vld [vmem:[#allocation2 + $0x8] sm:$0xff]  ;;  %v60_v7 = vld [vmem:[#allocation2 + $0x10] sm:$0xff] }
   0xd   :  { %v61_v11 = vmul.f32 %v60_v7, %v693_v0  ;;  %v64_v12 = vld [vmem:[#allocation2 + $0x18] sm:$0xff]  ;;  %v70_v13 = vld [vmem:[#allocation2 + $0x20] sm:$0xff]  ;;  %s657_s0 = smov 64   ;;  %s658_s28 = smov 48   ;;  %v78_v22 = vld [vmem:[#allocation2 + $0x28] sm:$0xff] }
   0xe   :  { %s659_s29 = smov 16   ;;  %s660_s30 = smov 112   ;;  %v82_v23 = vld [vmem:[#allocation2 + $0x30] sm:$0xff]  ;;  %v76_v25 = vld [vmem:[#allocation4 + $0x8] sm:$0xff]  ;;  %v94_v31 = vld [vmem:[#allocation2 + $0x40] sm:$0xff] }
   0xf   :  { %s661_s4 = smov 96   ;;  %s662_s5 = smov 32   ;;  %v88_v26 = vld [vmem:[#allocation2 + $0x38] sm:$0xff]  ;;  %v100_v33 = vld [vmem:[#allocation2 + $0x48] sm:$0xff]  ;;  %v106_v40 = vld [vmem:[#allocation2 + $0x50] sm:$0xff] }
  0x10   :  { %s663_s6 = smov 80   ;;  %v112_v43 = vld [vmem:[#allocation2 + $0x58] sm:$0xff]  ;;  %v118_v45 = vld [vmem:[#allocation2 + $0x60] sm:$0xff] }
  0x14   :  { %55 = vrot.lane.b32.xlu0 %v693_v0, %s655_s26  ;;  %71 = vrot.lane.b32.xlu1 %v693_v0, %s656_s27 }
  0x7e   :  { %v50_v1 = vpop.permute.xlu0 %49  ;;  %v66_v2 = vpop.permute.xlu1 %65 }
  0x7f   :  { %v51_v4 = vmul.f32 %v50_v1, %v48_v3  ;;  %v67_v16 = vmul.f32 %v66_v2, %v64_v12 }
  0x81   :  { %v52_v9 = vadd.f32 %v51_v4, %v47_v5 }
  0x86   :  { %v56_v8 = vpop.permute.xlu0 %55  ;;  %v72_v14 = vpop.permute.xlu1 %71 }
  0x87   :  { %v57_v10 = vmul.f32 %v56_v8, %v54_v6  ;;  %v73_v18 = vmul.f32 %v72_v14, %v70_v13 }
  0x89   :  { %v58_v15 = vadd.f32 %v57_v10, %v52_v9 }
  0x8b   :  { %v62_v17 = vadd.f32 %v61_v11, %v58_v15 }
  0x8d   :  { %v68_v19 = vadd.f32 %v67_v16, %v62_v17 }
  0x8f   :  { %v74_v20 = vadd.f32 %v73_v18, %v68_v19  ;;  %v155_v19 = vld [vmem:[#allocation2 + $0x68] sm:$0xff] }
  0x91   :  { %101 = vrot.lane.b32.xlu1 %v74_v20, %s657_s0  ;;  %95 = vrot.lane.b32.xlu0 %v74_v20, %s658_s28  ;;  %v79_v24 = vmul.f32 %v78_v22, %v74_v20  ;;  %v153_v22 = vld [vmem:[#allocation4 + $0x10] sm:$0xff] }
  0x92   :  { %83 = vrot.lane.b32.xlu2 %v74_v20, %s659_s29 }
  0x93   :  { %v80_v29 = vadd.f32 %v79_v24, %v76_v25  ;;  %v165_v24 = vld [vmem:[#allocation2 + $0x78] sm:$0xff] }
  0x99   :  { %119 = vrot.lane.b32.xlu1 %v74_v20, %s660_s30  ;;  %113 = vrot.lane.b32.xlu0 %v74_v20, %s661_s4 }
  0x9a   :  { %89 = vrot.lane.b32.xlu2 %v74_v20, %s662_s5 }
  0xa2   :  { %107 = vrot.lane.b32.xlu2 %v74_v20, %s663_s6  ;;  %v159_v20 = vld [vmem:[#allocation2 + $0x70] sm:$0xff] }
  0xec   :  { %v84_v21 = vpop.permute.xlu2 %83 }
  0xed   :  { %v85_v28 = vmul.f32 %v84_v21, %v82_v23 }
  0xef   :  { %v86_v32 = vadd.f32 %v85_v28, %v80_v29 }
  0xf4   :  { %v90_v27 = vpop.permute.xlu2 %89 }
  0xf5   :  { %v91_v30 = vmul.f32 %v90_v27, %v88_v26  ;;  %v171_v27 = vld [vmem:[#allocation2 + $0x80] sm:$0xff] }
  0xf7   :  { %v92_v36 = vadd.f32 %v91_v30, %v86_v32 }
  0xfc   :  { %v108_v41 = vpop.permute.xlu2 %107 }
  0xfd   :  { %v109_v44 = vmul.f32 %v108_v41, %v106_v40 }
 0x103   :  { %v102_v34 = vpop.permute.xlu1 %101  ;;  %v96_v35 = vpop.permute.xlu0 %95 }
 0x104   :  { %v97_v37 = vmul.f32 %v96_v35, %v94_v31  ;;  %v103_v38 = vmul.f32 %v102_v34, %v100_v33  ;;  %v177_v34 = vld [vmem:[#allocation2 + $0x88] sm:$0xff] }
 0x106   :  { %v98_v39 = vadd.f32 %v97_v37, %v92_v36  ;;  %v183_v36 = vld [vmem:[#allocation2 + $0x90] sm:$0xff] }
 0x108   :  { %v104_v42 = vadd.f32 %v103_v38, %v98_v39  ;;  %v189_v38 = vld [vmem:[#allocation2 + $0x98] sm:$0xff] }
 0x10a   :  { %v110_v48 = vadd.f32 %v109_v44, %v104_v42 }
 0x10b   :  { %v120_v46 = vpop.permute.xlu1 %119  ;;  %v114_v47 = vpop.permute.xlu0 %113 }
 0x10c   :  { %v115_v49 = vmul.f32 %v114_v47, %v112_v43  ;;  %v121_v50 = vmul.f32 %v120_v46, %v118_v45  ;;  %v195_v43 = vld [vmem:[#allocation2 + $0xa0] sm:$0xff] }
 0x10e   :  { %v116_v51 = vadd.f32 %v115_v49, %v110_v48  ;;  %v203_v49 = vld [vmem:[#allocation2 + $0xa8] sm:$0xff] }
 0x110   :  { %v122_v52 = vadd.f32 %v121_v50, %v116_v51  ;;  %v201_v51 = vld [vmem:[#allocation4 + $0x18] sm:$0xff] }
 0x112   :  { %v124_v53 = vmul.f32 0.70710677, %v122_v52  ;;  %v123_v15 = vmul.f32 0.5, %v122_v52  ;;  %v207_v52 = vld [vmem:[#allocation2 + $0xb0] sm:$0xff] }
 0x114   :  { %v125_v54 = vand.u32 2147483647, %v124_v53  ;;  %vm147_vm0 = vcmp.ge.f32.partialorder %v124_v53, 0.0 }
 0x116   :  { %v126_v55 = vmul.f32 0.3275911, %v125_v54  ;;  %v141_v61 = vsub.f32 0.0, %v125_v54 }
 0x118   :  { %v127_v56 = vadd.f32 1.0, %v126_v55  ;;  %v142_v1 = vmul.f32 %v141_v61, %v125_v54 }
 0x11a   :  { %581 = vrcp.f32 %v127_v56  ;;  %v143_v4 = vmul.f32 1.442695, %v142_v1  ;;  %v222_v1 = vld [vmem:[#allocation2 + $0xc8] sm:$0xff] }
 0x11c   :  { %583 = vpow2.f32 %v143_v4 }
 0x120   :  { %v582_v57 = vpop.eup %581 }
 0x121   :  { %v129_v58 = vmul.f32 %v582_v57, %v127_v56  ;;  %v212_v56 = vld [vmem:[#allocation2 + $0xb8] sm:$0xff] }
 0x122   :  { %v584_v10 = vpop.eup %583 }
 0x123   :  { %v130_v59 = vsub.f32 2.0, %v129_v58 }
 0x125   :  { %v131_v60 = vmul.f32 %v582_v57, %v130_v59 }
 0x127   :  { %v132_v62 = vmul.f32 1.0614054, %v131_v60 }
 0x129   :  { %v133_v63 = vadd.f32 -1.4531521, %v132_v62 }
 0x12b   :  { %v134_v2 = vmul.f32 %v133_v63, %v131_v60 }
 0x12d   :  { %v135_v3 = vadd.f32 1.4214138, %v134_v2 }
 0x12f   :  { %v136_v5 = vmul.f32 %v135_v3, %v131_v60 }
 0x131   :  { %v137_v6 = vadd.f32 -0.28449672, %v136_v5  ;;  %v227_v5 = vld [vmem:[#allocation2 + $0xd0] sm:$0xff] }
 0x133   :  { %v138_v7 = vmul.f32 %v137_v6, %v131_v60 }
 0x135   :  { %v139_v8 = vadd.f32 0.2548296, %v138_v7 }
 0x137   :  { %v140_v9 = vmul.f32 %v139_v8, %v131_v60  ;;  %v217_v60 = vld [vmem:[#allocation2 + $0xc0] sm:$0xff] }
 0x139   :  { %v145_v11 = vmul.f32 %v584_v10, %v140_v9  ;;  %v232_v9 = vld [vmem:[#allocation2 + $0xd8] sm:$0xff] }
 0x13b   :  { %v146_v12 = vsub.f32 1.0, %v145_v11 }
 0x13d   :  { %v148_v13 = vsub.f32 0.0, %v146_v12 }
 0x13f   :  { %v149_v14 = vsel %vm147_vm0, %v146_v12, %v148_v13 }
 0x140   :  { %v150_v16 = vadd.f32 1.0, %v149_v14 }
 0x142   :  { %v151_v17 = vmul.f32 %v150_v16, %v123_v15 }
 0x144   :  { %172 = vrot.lane.b32.xlu1 %v151_v17, %s658_s28  ;;  %166 = vrot.lane.b32.xlu0 %v151_v17, %s662_s5  ;;  %v156_v21 = vmul.f32 %v155_v19, %v151_v17 }
 0x145   :  { %160 = vrot.lane.b32.xlu2 %v151_v17, %s659_s29 }
 0x146   :  { %v157_v25 = vadd.f32 %v156_v21, %v153_v22 }
 0x14c   :  { %190 = vrot.lane.b32.xlu1 %v151_v17, %s661_s4  ;;  %184 = vrot.lane.b32.xlu0 %v151_v17, %s663_s6 }
 0x14d   :  { %178 = vrot.lane.b32.xlu2 %v151_v17, %s657_s0 }
 0x155   :  { %196 = vrot.lane.b32.xlu2 %v151_v17, %s660_s30 }
 0x19f   :  { %v161_v18 = vpop.permute.xlu2 %160 }
 0x1a0   :  { %v162_v23 = vmul.f32 %v161_v18, %v159_v20 }
 0x1a2   :  { %v163_v30 = vadd.f32 %v162_v23, %v157_v25 }
 0x1a7   :  { %v179_v26 = vpop.permute.xlu2 %178 }
 0x1a8   :  { %v180_v37 = vmul.f32 %v179_v26, %v177_v34 }
 0x1af   :  { %v197_v44 = vpop.permute.xlu2 %196 }
 0x1b0   :  { %v198_v47 = vmul.f32 %v197_v44, %v195_v43  ;;  %v266_v44 = vld [vmem:[#allocation4 + $0x20] sm:$0xff] }
 0x1b6   :  { %v173_v28 = vpop.permute.xlu1 %172  ;;  %v167_v29 = vpop.permute.xlu0 %166 }
 0x1b7   :  { %v168_v31 = vmul.f32 %v167_v29, %v165_v24  ;;  %v174_v32 = vmul.f32 %v173_v28, %v171_v27 }
 0x1b9   :  { %v169_v33 = vadd.f32 %v168_v31, %v163_v30 }
 0x1bb   :  { %v175_v35 = vadd.f32 %v174_v32, %v169_v33 }
 0x1bd   :  { %v181_v41 = vadd.f32 %v180_v37, %v175_v35 }
 0x1be   :  { %v191_v39 = vpop.permute.xlu1 %190  ;;  %v185_v40 = vpop.permute.xlu0 %184 }
 0x1bf   :  { %v186_v42 = vmul.f32 %v185_v40, %v183_v36  ;;  %v192_v45 = vmul.f32 %v191_v39, %v189_v38 }
 0x1c1   :  { %v187_v46 = vadd.f32 %v186_v42, %v181_v41  ;;  %v268_v42 = vld [vmem:[#allocation2 + $0xe0] sm:$0xff] }
 0x1c3   :  { %v193_v48 = vadd.f32 %v192_v45, %v187_v46  ;;  %v272_v45 = vld [vmem:[#allocation2 + $0xe8] sm:$0xff] }
 0x1c5   :  { %v199_v50 = vadd.f32 %v198_v47, %v193_v48 }
 0x1c7   :  { %v204_v53 = vmul.f32 %v203_v49, %v199_v50  ;;  %v208_v54 = vrot.slane %v199_v50, 7  ;;  %v213_v55 = vrot.slane %v199_v50, 6  ;;  %v218_v59 = vrot.slane %v199_v50, 5  ;;  %v277_v49 = vld [vmem:[#allocation2 + $0xf0] sm:$0xff] }
 0x1c8   :  { %v223_v63 = vrot.slane %v199_v50, 3  ;;  %v228_v4 = vrot.slane %v199_v50, 2  ;;  %v233_v8 = vrot.slane %v199_v50, 1 }
 0x1c9   :  { %v205_v57 = vadd.f32 %v204_v53, %v201_v51  ;;  %v209_v58 = vmul.f32 %v208_v54, %v207_v52  ;;  %v214_v62 = vmul.f32 %v213_v55, %v212_v56  ;;  %v219_v3 = vmul.f32 %v218_v59, %v217_v60  ;;  %v282_v53 = vld [vmem:[#allocation2 + $0xf8] sm:$0xff] }
 0x1ca   :  { %v224_v7 = vmul.f32 %v223_v63, %v222_v1  ;;  %v229_v11 = vmul.f32 %v228_v4, %v227_v5  ;;  %v234_v13 = vmul.f32 %v233_v8, %v232_v9  ;;  %v305_v9 = vld [vmem:[#allocation2 + $0x118] sm:$0xff] }
 0x1cb   :  { %v210_v61 = vadd.f32 %v209_v58, %v205_v57  ;;  %v287_v57 = vld [vmem:[#allocation2 + $0x100] sm:$0xff] }
 0x1cd   :  { %v215_v2 = vadd.f32 %v214_v62, %v210_v61  ;;  %v292_v61 = vld [vmem:[#allocation2 + $0x108] sm:$0xff] }
 0x1cf   :  { %v220_v6 = vadd.f32 %v219_v3, %v215_v2  ;;  %v297_v2 = vld [vmem:[#allocation2 + $0x110] sm:$0xff] }
 0x1d1   :  { %v225_v10 = vadd.f32 %v224_v7, %v220_v6 }
 0x1d3   :  { %v230_v12 = vadd.f32 %v229_v11, %v225_v10  ;;  %v311_v10 = vld [vmem:[#allocation2 + $0x120] sm:$0xff] }
 0x1d5   :  { %v235_v14 = vadd.f32 %v234_v13, %v230_v12  ;;  %v303_v12 = vld [vmem:[#allocation4 + $0x28] sm:$0xff] }
 0x1d7   :  { %v237_v15 = vmul.f32 0.70710677, %v235_v14  ;;  %v236_v40 = vmul.f32 0.5, %v235_v14 }
 0x1d9   :  { %v238_v16 = vand.u32 2147483647, %v237_v15  ;;  %vm260_vm1 = vcmp.ge.f32.partialorder %v237_v15, 0.0 }
 0x1db   :  { %v239_v17 = vmul.f32 0.3275911, %v238_v16  ;;  %v254_v23 = vsub.f32 0.0, %v238_v16 }
 0x1dd   :  { %v240_v18 = vadd.f32 1.0, %v239_v17  ;;  %v255_v26 = vmul.f32 %v254_v23, %v238_v16  ;;  %v321_v17 = vld [vmem:[#allocation2 + $0x130] sm:$0xff] }
 0x1df   :  { %585 = vrcp.f32 %v240_v18  ;;  %v256_v29 = vmul.f32 1.442695, %v255_v26 }
 0x1e1   :  { %587 = vpow2.f32 %v256_v29 }
 0x1e5   :  { %v586_v19 = vpop.eup %585 }
 0x1e6   :  { %v242_v20 = vmul.f32 %v586_v19, %v240_v18 }
 0x1e7   :  { %v588_v35 = vpop.eup %587 }
 0x1e8   :  { %v243_v21 = vsub.f32 2.0, %v242_v20 }
 0x1ea   :  { %v244_v22 = vmul.f32 %v586_v19, %v243_v21  ;;  %v327_v21 = vld [vmem:[#allocation2 + $0x138] sm:$0xff] }
 0x1ec   :  { %v245_v24 = vmul.f32 1.0614054, %v244_v22 }
 0x1ee   :  { %v246_v25 = vadd.f32 -1.4531521, %v245_v24 }
 0x1f0   :  { %v247_v27 = vmul.f32 %v246_v25, %v244_v22 }
 0x1f2   :  { %v248_v28 = vadd.f32 1.4214138, %v247_v27 }
 0x1f4   :  { %v249_v30 = vmul.f32 %v248_v28, %v244_v22  ;;  %v335_v28 = vld [vmem:[#allocation2 + $0x140] sm:$0xff] }
 0x1f6   :  { %v250_v31 = vadd.f32 -0.28449672, %v249_v30 }
 0x1f8   :  { %v251_v32 = vmul.f32 %v250_v31, %v244_v22  ;;  %v333_v31 = vld [vmem:[#allocation4 + $0x30] sm:$0xff] }
 0x1fa   :  { %v252_v33 = vadd.f32 0.2548296, %v251_v32  ;;  %v339_v32 = vld [vmem:[#allocation2 + $0x148] sm:$0xff] }
 0x1fc   :  { %v253_v34 = vmul.f32 %v252_v33, %v244_v22  ;;  %v345_v33 = vld [vmem:[#allocation2 + $0x150] sm:$0xff] }
 0x1fe   :  { %v258_v36 = vmul.f32 %v588_v35, %v253_v34 }
 0x200   :  { %v259_v37 = vsub.f32 1.0, %v258_v36 }
 0x202   :  { %v261_v38 = vsub.f32 0.0, %v259_v37 }
 0x204   :  { %v262_v39 = vsel %vm260_vm1, %v259_v37, %v261_v38 }
 0x205   :  { %v263_v41 = vadd.f32 1.0, %v262_v39 }
 0x207   :  { %v264_v43 = vmul.f32 %v263_v41, %v236_v40  ;;  %v351_v40 = vld [vmem:[#allocation2 + $0x158] sm:$0xff] }
 0x209   :  { %v269_v46 = vmul.f32 %v268_v42, %v264_v43  ;;  %v273_v47 = vrot.slane %v264_v43, 7  ;;  %v278_v48 = vrot.slane %v264_v43, 6  ;;  %v283_v52 = vrot.slane %v264_v43, 5  ;;  %v357_v42 = vld [vmem:[#allocation2 + $0x160] sm:$0xff] }
 0x20a   :  { %v288_v56 = vrot.slane %v264_v43, 3  ;;  %v293_v60 = vrot.slane %v264_v43, 2  ;;  %v298_v1 = vrot.slane %v264_v43, 1 }
 0x20b   :  { %v270_v50 = vadd.f32 %v269_v46, %v266_v44  ;;  %v274_v51 = vmul.f32 %v273_v47, %v272_v45  ;;  %v279_v55 = vmul.f32 %v278_v48, %v277_v49  ;;  %v284_v59 = vmul.f32 %v283_v52, %v282_v53  ;;  %v363_v44 = vld [vmem:[#allocation2 + $0x168] sm:$0xff] }
 0x20c   :  { %v289_v63 = vmul.f32 %v288_v56, %v287_v57  ;;  %v294_v4 = vmul.f32 %v293_v60, %v292_v61  ;;  %v299_v6 = vmul.f32 %v298_v1, %v297_v2 }
 0x20d   :  { %v275_v54 = vadd.f32 %v274_v51, %v270_v50  ;;  %v369_v51 = vld [vmem:[#allocation2 + $0x170] sm:$0xff] }
 0x20f   :  { %v280_v58 = vadd.f32 %v279_v55, %v275_v54  ;;  %v375_v54 = vld [vmem:[#allocation2 + $0x178] sm:$0xff] }
 0x211   :  { %v285_v62 = vadd.f32 %v284_v59, %v280_v58 }
 0x213   :  { %v290_v3 = vadd.f32 %v289_v63, %v285_v62 }
 0x215   :  { %v295_v5 = vadd.f32 %v294_v4, %v290_v3 }
 0x217   :  { %v300_v7 = vadd.f32 %v299_v6, %v295_v5 }
 0x219   :  { %v719_v8 = vadd.f32 %v300_v7, %v693_v0  ;;  %v317_v0 = vld [vmem:[#allocation2 + $0x128] sm:$0xff] }
 0x21b   :  { %322 = vrot.lane.b32.xlu2 %v719_v8, %s654_s2  ;;  %312 = vrot.lane.b32.xlu1 %v719_v8, %s655_s26  ;;  %v318_v20 = vmul.f32 %v317_v0, %v719_v8 }
 0x21c   :  { %306 = vrot.lane.b32.xlu0 %v719_v8, %s653_s25 }
 0x224   :  { %328 = vrot.lane.b32.xlu0 %v719_v8, %s656_s27 }
 0x275   :  { %v323_v18 = vpop.permute.xlu2 %322 }
 0x276   :  { %v324_v22 = vmul.f32 %v323_v18, %v321_v17 }
 0x28d   :  { %v313_v11 = vpop.permute.xlu1 %312 }
 0x28e   :  { %v307_v13 = vpop.permute.xlu0 %306  ;;  %v314_v15 = vmul.f32 %v313_v11, %v311_v10 }
 0x28f   :  { %v308_v14 = vmul.f32 %v307_v13, %v305_v9 }
 0x291   :  { %v309_v16 = vadd.f32 %v308_v14, %v303_v12 }
 0x293   :  { %v315_v19 = vadd.f32 %v314_v15, %v309_v16 }
 0x295   :  { %v319_v23 = vadd.f32 %v318_v20, %v315_v19 }
 0x296   :  { %v329_v24 = vpop.permute.xlu0 %328 }
 0x297   :  { %v325_v25 = vadd.f32 %v324_v22, %v319_v23  ;;  %v330_v26 = vmul.f32 %v329_v24, %v327_v21 }
 0x299   :  { %v331_v27 = vadd.f32 %v330_v26, %v325_v25  ;;  %v412_v26 = vld [vmem:[#allocation2 + $0x180] sm:$0xff] }
 0x29b   :  { %352 = vrot.lane.b32.xlu0 %v331_v27, %s658_s28  ;;  %346 = vrot.lane.b32.xlu2 %v331_v27, %s662_s5  ;;  %v336_v29 = vmul.f32 %v335_v28, %v331_v27 }
 0x29c   :  { %340 = vrot.lane.b32.xlu1 %v331_v27, %s659_s29 }
 0x29d   :  { %v337_v35 = vadd.f32 %v336_v29, %v333_v31  ;;  %v410_v29 = vld [vmem:[#allocation4 + $0x38] sm:$0xff]  ;;  %v422_v31 = vld [vmem:[#allocation2 + $0x190] sm:$0xff] }
 0x2a3   :  { %370 = vrot.lane.b32.xlu0 %v331_v27, %s661_s4  ;;  %364 = vrot.lane.b32.xlu2 %v331_v27, %s663_s6 }
 0x2a4   :  { %358 = vrot.lane.b32.xlu1 %v331_v27, %s657_s0 }
 0x2ac   :  { %376 = vrot.lane.b32.xlu1 %v331_v27, %s660_s30  ;;  %v416_v27 = vld [vmem:[#allocation2 + $0x188] sm:$0xff] }
 0x2f5   :  { %v347_v30 = vpop.permute.xlu2 %346 }
 0x2f6   :  { %v348_v38 = vmul.f32 %v347_v30, %v345_v33 }
 0x2fd   :  { %v365_v45 = vpop.permute.xlu2 %364 }
 0x2fe   :  { %v366_v49 = vmul.f32 %v365_v45, %v363_v44  ;;  %v446_v45 = vld [vmem:[#allocation2 + $0x1b0] sm:$0xff] }
 0x30d   :  { %v353_v37 = vpop.permute.xlu0 %352 }
 0x30e   :  { %v341_v34 = vpop.permute.xlu1 %340  ;;  %v354_v43 = vmul.f32 %v353_v37, %v351_v40 }
 0x30f   :  { %v342_v36 = vmul.f32 %v341_v34, %v339_v32  ;;  %v428_v34 = vld [vmem:[#allocation2 + $0x198] sm:$0xff] }
 0x311   :  { %v343_v39 = vadd.f32 %v342_v36, %v337_v35 }
 0x313   :  { %v349_v41 = vadd.f32 %v348_v38, %v343_v39 }
 0x315   :  { %v355_v47 = vadd.f32 %v354_v43, %v349_v41  ;;  %v371_v52 = vpop.permute.xlu0 %370  ;;  %v434_v41 = vld [vmem:[#allocation2 + $0x1a0] sm:$0xff]  ;;  %v440_v43 = vld [vmem:[#allocation2 + $0x1a8] sm:$0xff] }
 0x316   :  { %v359_v46 = vpop.permute.xlu1 %358  ;;  %v372_v55 = vmul.f32 %v371_v52, %v369_v51 }
 0x317   :  { %v360_v48 = vmul.f32 %v359_v46, %v357_v42 }
 0x319   :  { %v361_v50 = vadd.f32 %v360_v48, %v355_v47 }
 0x31b   :  { %v367_v53 = vadd.f32 %v366_v49, %v361_v50  ;;  %v452_v50 = vld [vmem:[#allocation2 + $0x1b8] sm:$0xff] }
 0x31d   :  { %v373_v57 = vadd.f32 %v372_v55, %v367_v53 }
 0x31e   :  { %v377_v56 = vpop.permute.xlu1 %376 }
 0x31f   :  { %v378_v58 = vmul.f32 %v377_v56, %v375_v54  ;;  %v460_v56 = vld [vmem:[#allocation2 + $0x1c0] sm:$0xff] }
 0x321   :  { %v379_v59 = vadd.f32 %v378_v58, %v373_v57  ;;  %v458_v58 = vld [vmem:[#allocation4 + $0x40] sm:$0xff] }
 0x323   :  { %v381_v60 = vmul.f32 0.70710677, %v379_v59  ;;  %v380_v22 = vmul.f32 0.5, %v379_v59  ;;  %v464_v59 = vld [vmem:[#allocation2 + $0x1c8] sm:$0xff] }
 0x325   :  { %v382_v61 = vand.u32 2147483647, %v381_v60  ;;  %vm404_vm2 = vcmp.ge.f32.partialorder %v381_v60, 0.0 }
 0x327   :  { %v383_v62 = vmul.f32 0.3275911, %v382_v61  ;;  %v398_v5 = vsub.f32 0.0, %v382_v61 }
 0x329   :  { %v384_v63 = vadd.f32 1.0, %v383_v62  ;;  %v399_v9 = vmul.f32 %v398_v5, %v382_v61 }
 0x32b   :  { %589 = vrcp.f32 %v384_v63  ;;  %v400_v12 = vmul.f32 1.442695, %v399_v9  ;;  %v479_v9 = vld [vmem:[#allocation2 + $0x1e0] sm:$0xff] }
 0x32d   :  { %591 = vpow2.f32 %v400_v12 }
 0x331   :  { %v590_v1 = vpop.eup %589 }
 0x332   :  { %v386_v2 = vmul.f32 %v590_v1, %v384_v63  ;;  %v469_v63 = vld [vmem:[#allocation2 + $0x1d0] sm:$0xff] }
 0x333   :  { %v592_v17 = vpop.eup %591 }
 0x334   :  { %v387_v3 = vsub.f32 2.0, %v386_v2 }
 0x336   :  { %v388_v4 = vmul.f32 %v590_v1, %v387_v3 }
 0x338   :  { %v389_v6 = vmul.f32 1.0614054, %v388_v4 }
 0x33a   :  { %v390_v7 = vadd.f32 -1.4531521, %v389_v6 }
 0x33c   :  { %v391_v10 = vmul.f32 %v390_v7, %v388_v4 }
 0x33e   :  { %v392_v11 = vadd.f32 1.4214138, %v391_v10 }
 0x340   :  { %v393_v13 = vmul.f32 %v392_v11, %v388_v4 }
 0x342   :  { %v394_v14 = vadd.f32 -0.28449672, %v393_v13  ;;  %v484_v13 = vld [vmem:[#allocation2 + $0x1e8] sm:$0xff] }
 0x344   :  { %v395_v0 = vmul.f32 %v394_v14, %v388_v4 }
 0x346   :  { %v396_v15 = vadd.f32 0.2548296, %v395_v0 }
 0x348   :  { %v397_v16 = vmul.f32 %v396_v15, %v388_v4  ;;  %v474_v4 = vld [vmem:[#allocation2 + $0x1d8] sm:$0xff] }
 0x34a   :  { %v402_v18 = vmul.f32 %v592_v17, %v397_v16  ;;  %v489_v16 = vld [vmem:[#allocation2 + $0x1f0] sm:$0xff] }
 0x34c   :  { %v403_v19 = vsub.f32 1.0, %v402_v18 }
 0x34e   :  { %v405_v20 = vsub.f32 0.0, %v403_v19 }
 0x350   :  { %v406_v21 = vsel %vm404_vm2, %v403_v19, %v405_v20 }
 0x351   :  { %v407_v23 = vadd.f32 1.0, %v406_v21 }
 0x353   :  { %v408_v24 = vmul.f32 %v407_v23, %v380_v22 }
 0x355   :  { %429 = vrot.lane.b32.xlu1 %v408_v24, %s658_s28  ;;  %423 = vrot.lane.b32.xlu0 %v408_v24, %s662_s5  ;;  %v413_v28 = vmul.f32 %v412_v26, %v408_v24 }
 0x356   :  { %417 = vrot.lane.b32.xlu2 %v408_v24, %s659_s29 }
 0x357   :  { %v414_v32 = vadd.f32 %v413_v28, %v410_v29 }
 0x35d   :  { %447 = vrot.lane.b32.xlu1 %v408_v24, %s661_s4  ;;  %441 = vrot.lane.b32.xlu0 %v408_v24, %s663_s6 }
 0x35e   :  { %435 = vrot.lane.b32.xlu2 %v408_v24, %s657_s0 }
 0x366   :  { %453 = vrot.lane.b32.xlu2 %v408_v24, %s660_s30 }
 0x3b0   :  { %v418_v25 = vpop.permute.xlu2 %417 }
 0x3b1   :  { %v419_v30 = vmul.f32 %v418_v25, %v416_v27 }
 0x3b3   :  { %v420_v37 = vadd.f32 %v419_v30, %v414_v32 }
 0x3b8   :  { %v436_v33 = vpop.permute.xlu2 %435 }
 0x3b9   :  { %v437_v44 = vmul.f32 %v436_v33, %v434_v41 }
 0x3c0   :  { %v454_v51 = vpop.permute.xlu2 %453 }
 0x3c1   :  { %v455_v54 = vmul.f32 %v454_v51, %v452_v50  ;;  %v523_v51 = vld [vmem:[#allocation4 + $0x48] sm:$0xff] }
 0x3c7   :  { %v430_v35 = vpop.permute.xlu1 %429  ;;  %v424_v36 = vpop.permute.xlu0 %423 }
 0x3c8   :  { %v425_v38 = vmul.f32 %v424_v36, %v422_v31  ;;  %v431_v39 = vmul.f32 %v430_v35, %v428_v34 }
 0x3ca   :  { %v426_v40 = vadd.f32 %v425_v38, %v420_v37 }
 0x3cc   :  { %v432_v42 = vadd.f32 %v431_v39, %v426_v40 }
 0x3ce   :  { %v438_v48 = vadd.f32 %v437_v44, %v432_v42 }
 0x3cf   :  { %v448_v46 = vpop.permute.xlu1 %447  ;;  %v442_v47 = vpop.permute.xlu0 %441 }
 0x3d0   :  { %v443_v49 = vmul.f32 %v442_v47, %v440_v43  ;;  %v449_v52 = vmul.f32 %v448_v46, %v446_v45 }
 0x3d2   :  { %v444_v53 = vadd.f32 %v443_v49, %v438_v48  ;;  %v525_v49 = vld [vmem:[#allocation2 + $0x1f8] sm:$0xff] }
 0x3d4   :  { %v450_v55 = vadd.f32 %v449_v52, %v444_v53  ;;  %v529_v52 = vld [vmem:[#allocation2 + $0x200] sm:$0xff] }
 0x3d6   :  { %v456_v57 = vadd.f32 %v455_v54, %v450_v55 }
 0x3d8   :  { %v461_v60 = vmul.f32 %v460_v56, %v456_v57  ;;  %v465_v61 = vrot.slane %v456_v57, 7  ;;  %v470_v62 = vrot.slane %v456_v57, 6  ;;  %v475_v3 = vrot.slane %v456_v57, 5  ;;  %v534_v56 = vld [vmem:[#allocation2 + $0x208] sm:$0xff] }
 0x3d9   :  { %v480_v7 = vrot.slane %v456_v57, 3  ;;  %v485_v12 = vrot.slane %v456_v57, 2  ;;  %v490_v15 = vrot.slane %v456_v57, 1 }
 0x3da   :  { %v462_v1 = vadd.f32 %v461_v60, %v458_v58  ;;  %v466_v2 = vmul.f32 %v465_v61, %v464_v59  ;;  %v471_v6 = vmul.f32 %v470_v62, %v469_v63  ;;  %v476_v11 = vmul.f32 %v475_v3, %v474_v4  ;;  %v539_v60 = vld [vmem:[#allocation2 + $0x210] sm:$0xff] }
 0x3db   :  { %v481_v0 = vmul.f32 %v480_v7, %v479_v9  ;;  %v486_v18 = vmul.f32 %v485_v12, %v484_v13  ;;  %v491_v20 = vmul.f32 %v490_v15, %v489_v16 }
 0x3dc   :  { %v467_v5 = vadd.f32 %v466_v2, %v462_v1  ;;  %v544_v1 = vld [vmem:[#allocation2 + $0x218] sm:$0xff] }
 0x3de   :  { %v472_v10 = vadd.f32 %v471_v6, %v467_v5  ;;  %v549_v5 = vld [vmem:[#allocation2 + $0x220] sm:$0xff] }
 0x3e0   :  { %v477_v14 = vadd.f32 %v476_v11, %v472_v10  ;;  %v554_v10 = vld [vmem:[#allocation2 + $0x228] sm:$0xff] }
 0x3e2   :  { %v482_v17 = vadd.f32 %v481_v0, %v477_v14 }
 0x3e4   :  { %v487_v19 = vadd.f32 %v486_v18, %v482_v17 }
 0x3e6   :  { %v492_v21 = vadd.f32 %v491_v20, %v487_v19 }
 0x3e8   :  { %v494_v22 = vmul.f32 0.70710677, %v492_v21  ;;  %v493_v47 = vmul.f32 0.5, %v492_v21 }
 0x3ea   :  { %v495_v23 = vand.u32 2147483647, %v494_v22  ;;  %vm517_vm3 = vcmp.ge.f32.partialorder %v494_v22, 0.0 }
 0x3ec   :  { %v496_v24 = vmul.f32 0.3275911, %v495_v23  ;;  %v511_v30 = vsub.f32 0.0, %v495_v23 }
 0x3ee   :  { %v497_v25 = vadd.f32 1.0, %v496_v24  ;;  %v512_v33 = vmul.f32 %v511_v30, %v495_v23 }
 0x3f0   :  { %593 = vrcp.f32 %v497_v25  ;;  %v513_v36 = vmul.f32 1.442695, %v512_v33 }
 0x3f2   :  { %595 = vpow2.f32 %v513_v36 }
 0x3f6   :  { %v594_v26 = vpop.eup %593 }
 0x3f7   :  { %v499_v27 = vmul.f32 %v594_v26, %v497_v25 }
 0x3f8   :  { %v596_v42 = vpop.eup %595 }
 0x3f9   :  { %v500_v28 = vsub.f32 2.0, %v499_v27 }
 0x3fb   :  { %v501_v29 = vmul.f32 %v594_v26, %v500_v28 }
 0x3fd   :  { %v502_v31 = vmul.f32 1.0614054, %v501_v29 }
 0x3ff   :  { %v503_v32 = vadd.f32 -1.4531521, %v502_v31 }
 0x401   :  { %v504_v34 = vmul.f32 %v503_v32, %v501_v29 }
 0x403   :  { %v505_v35 = vadd.f32 1.4214138, %v504_v34 }
 0x405   :  { %v506_v37 = vmul.f32 %v505_v35, %v501_v29 }
 0x407   :  { %v507_v38 = vadd.f32 -0.28449672, %v506_v37 }
 0x409   :  { %v508_v39 = vmul.f32 %v507_v38, %v501_v29 }
 0x40b   :  { %v509_v40 = vadd.f32 0.2548296, %v508_v39 }
 0x40d   :  { %v510_v41 = vmul.f32 %v509_v40, %v501_v29 }
 0x40f   :  { %v515_v43 = vmul.f32 %v596_v42, %v510_v41 }
 0x411   :  { %v516_v44 = vsub.f32 1.0, %v515_v43 }
 0x413   :  { %v518_v45 = vsub.f32 0.0, %v516_v44 }
 0x415   :  { %v519_v46 = vsel %vm517_vm3, %v516_v44, %v518_v45 }
 0x416   :  { %v520_v48 = vadd.f32 1.0, %v519_v46 }
 0x418   :  { %v521_v50 = vmul.f32 %v520_v48, %v493_v47 }
 0x41a   :  { %v526_v53 = vmul.f32 %v525_v49, %v521_v50  ;;  %v530_v54 = vrot.slane %v521_v50, 7  ;;  %v535_v55 = vrot.slane %v521_v50, 6  ;;  %v540_v59 = vrot.slane %v521_v50, 5 }
 0x41b   :  { %v545_v63 = vrot.slane %v521_v50, 3  ;;  %v550_v4 = vrot.slane %v521_v50, 2  ;;  %v555_v9 = vrot.slane %v521_v50, 1 }
 0x41c   :  { %v527_v57 = vadd.f32 %v526_v53, %v523_v51  ;;  %v531_v58 = vmul.f32 %v530_v54, %v529_v52  ;;  %v536_v62 = vmul.f32 %v535_v55, %v534_v56  ;;  %v541_v3 = vmul.f32 %v540_v59, %v539_v60 }
 0x41d   :  { %v546_v7 = vmul.f32 %v545_v63, %v544_v1  ;;  %v551_v12 = vmul.f32 %v550_v4, %v549_v5  ;;  %v556_v14 = vmul.f32 %v555_v9, %v554_v10 }
 0x41e   :  { %v532_v61 = vadd.f32 %v531_v58, %v527_v57 }
 0x420   :  { %v537_v2 = vadd.f32 %v536_v62, %v532_v61 }
 0x422   :  { %v542_v6 = vadd.f32 %v541_v3, %v537_v2 }
 0x424   :  { %v547_v11 = vadd.f32 %v546_v7, %v542_v6 }
 0x426   :  { %v552_v13 = vadd.f32 %v551_v12, %v547_v11 }
 0x428   :  { %v557_v0 = vadd.f32 %v556_v14, %v552_v13 }
 0x42a   :  { %v558_v15 = vadd.f32 %v557_v0, %v719_v8 }
 0x42c   :  { %559 = vst [vmem:[%s751_s3] sm:$0xff] %v558_v15 }
 0x42d   :  { %564 = vsyncpa [#allocation3], 1 }
 0x42e   :  { %565 = vsyncpa [#allocation5], 1 }

</bundles_post_ra>
